<compile_context>
chip_gen: v7x
topology: tpu7x:2x2x1
jax: 0.10.0
libtpu: 0.0.40
codegen_flags: <defaults>
</compile_context>

<pallas_src>
import functools
import math

import jax
import jax.numpy as jnp
from jax.experimental import pallas as pl
from jax.experimental.pallas import tpu as pltpu


# -----------------------------------------------------------------------------
# Kernel 1: fused QKV projection (runs once per token, not once per q-tile).
# -----------------------------------------------------------------------------
def _qkv_proj_kernel(x_ref, wqkv_ref, bqkv_ref, q_ref, k_ref, v_ref,
                     *, n_heads, head_dim):
    x = x_ref[...].astype(jnp.bfloat16)                    # bf16 operands, f32 acc
    proj = jnp.dot(x, wqkv_ref[...], preferred_element_type=jnp.float32)
    proj = proj + bqkv_ref[...].astype(jnp.float32)        # (ts, 3D)
    d_model = n_heads * head_dim
    scale = 1.0 / math.sqrt(head_dim)
    # Split heads once here (head-major (H, ts, dh) bf16 output) so the flash
    # kernel's inner loop never touches sub-128-lane column slices.
    for h in range(n_heads):
        lo, hi = h * head_dim, (h + 1) * head_dim
        q_ref[h] = (proj[:, lo:hi] * scale).astype(q_ref.dtype)   # fold 1/sqrt(dh)
        k_ref[h] = proj[:, d_model + lo:d_model + hi].astype(k_ref.dtype)
        v_ref[h] = proj[:, 2 * d_model + lo:2 * d_model + hi].astype(v_ref.dtype)


# -----------------------------------------------------------------------------
# Kernel 2: flash attention over kv tiles + fused output projection.
# -----------------------------------------------------------------------------
def _flash_attn_kernel(q_ref, k_ref, v_ref, wout_ref, bout_ref, o_ref,
                       m_scr, l_scr, acc_scr, *, n_heads):
    ki = pl.program_id(2)
    nk = pl.num_programs(2)

    @pl.when(ki == 0)
    def _init():
        m_scr[...] = jnp.full(m_scr.shape, -jnp.inf, m_scr.dtype)
        l_scr[...] = jnp.zeros(l_scr.shape, l_scr.dtype)
        acc_scr[...] = jnp.zeros(acc_scr.shape, acc_scr.dtype)

    q = q_ref[...]                     # (H, tq, dh) bf16, pre-scaled by 1/sqrt(dh)
    k = k_ref[...]                     # (H, tk, dh) bf16
    v = v_ref[...]                     # (H, tk, dh) bf16

    # Batched-over-heads q . k^T (contract dh, batch H) -> (H, tq, tk), f32 acc.
    s = jnp.einsum('hqd,hkd->hqk', q, k, preferred_element_type=jnp.float32)

    m_prev = m_scr[...]                                        # (H, tq, 1)
    m_new = jnp.maximum(m_prev, jnp.max(s, axis=-1, keepdims=True))
    alpha = jnp.exp(m_prev - m_new)
    # NOTE: exp over (H, tq, tk) is the EUP-bound slot for small dh on v6e/v7x;
    # bf16 exp would relieve it if the accuracy budget allows (not done here).
    p = jnp.exp(s - m_new)                                     # (H, tq, tk)
    l_scr[...] = alpha * l_scr[...] + jnp.sum(p, axis=-1, keepdims=True)
    pv = jnp.einsum('hqk,hkd->hqd', p.astype(v.dtype), v,
                    preferred_element_type=jnp.float32)
    acc_scr[...] = alpha * acc_scr[...] + pv
    m_scr[...] = m_new

    @pl.when(ki == nk - 1)
    def _final():
        # Exact normalization (once per q tile) for closer PyTorch parity.
        o_h = (acc_scr[...] / l_scr[...]).astype(jnp.bfloat16)   # (H, tq, dh)
        out = bout_ref[...].astype(jnp.float32)                  # (1, D), broadcasts
        for h in range(n_heads):                                 # finalize-only loop
            out = out + jnp.dot(o_h[h], wout_ref[h],
                                preferred_element_type=jnp.float32)
        o_ref[...] = out.astype(o_ref.dtype)


# -----------------------------------------------------------------------------
# One-time parameter preparation (parameter-load time, NOT per forward).
# -----------------------------------------------------------------------------
def prepare_mha_params(wqkv, bqkv, wout, bout, n_heads):
    """Transpose PyTorch (out,in) Linear weights to (in,out), reshape the output
    projection head-major (H, dh, D), and cast everything to bf16 (MXU-native on
    v6e/v7x; halves VMEM/HBM traffic)."""
    out_dim = wout.shape[0]
    dh = out_dim // n_heads
    wqkv_t = jnp.transpose(wqkv).astype(jnp.bfloat16)                    # (D, 3D)
    bqkv2 = bqkv.reshape(1, 3 * out_dim).astype(jnp.bfloat16)            # (1, 3D)
    wout_h = jnp.transpose(wout).reshape(n_heads, dh, out_dim).astype(jnp.bfloat16)
    bout2 = bout.reshape(1, out_dim).astype(jnp.bfloat16)                # (1, D)
    return wqkv_t, bqkv2, wout_h, bout2


def _chip_defaults():
    """Per-TPU-generation (q_block, kv_block, vmem_limit_bytes)."""
    kind = ""
    try:
        kind = jax.devices()[0].device_kind.lower()
    except Exception:
        pass
    if "v5 lite" in kind or "v5e" in kind:
        return 128, 128, 96 * 1024 * 1024     # 4x(128x128) MXU; 128 MiB VMEM
    if "v7" in kind:
        return 256, 256, 48 * 1024 * 1024     # 64 MiB physical VMEM -> headroom
    if "v6" in kind:
        return 512, 256, 96 * 1024 * 1024     # big q tiles amortize per-step cost
    return 256, 256, 64 * 1024 * 1024         # unknown / v4 / v5p: conservative


def _mha_forward(x, params, n_heads, tq, tk, vmem_limit_bytes, single_buffer_weights):
    B, S, D = x.shape
    dh = D // n_heads
    wqkv_t, bqkv2, wout_h, bout2 = params
    nq, nk = S // tq, S // tk
    bf16 = jnp.bfloat16

    def wspec(shape, index_map):
        # Constant-index weight blocks: request single buffering so the pipeline
        # does not allocate a useless second VMEM copy of large weights.
        if single_buffer_weights:
            return pl.BlockSpec(shape, index_map, pipeline_mode=pl.Buffered(1))
        return pl.BlockSpec(shape, index_map)

    # -------- pass 1: fused QKV projection (once per token, head-major out) ----
    proj_cost = pl.CostEstimate(
        flops=int(2 * B * S * D * 3 * D),
        transcendentals=0,
        bytes_accessed=int(x.dtype.itemsize * B * S * D        # read x
                           + 2 * (3 * D * D + 3 * D)           # bf16 weights/bias
                           + 2 * 3 * B * S * D))               # bf16 q,k,v out
    qkv_shape = jax.ShapeDtypeStruct((B, n_heads, S, dh), bf16)
    q, k, v = pl.pallas_call(
        functools.partial(_qkv_proj_kernel, n_heads=n_heads, head_dim=dh),
        out_shape=(qkv_shape, qkv_shape, qkv_shape),
        grid_spec=pltpu.PrefetchScalarGridSpec(
            num_scalar_prefetch=0,
            grid=(B, nq),
            in_specs=[
                pl.BlockSpec((None, tq, D), lambda b, si: (b, si, 0)),    # x tile
                wspec((D, 3 * D), lambda b, si: (0, 0)),                  # Wqkv
                wspec((1, 3 * D), lambda b, si: (0, 0)),                  # bqkv
            ],
            out_specs=[
                pl.BlockSpec((None, n_heads, tq, dh), lambda b, si: (b, 0, si, 0)),
                pl.BlockSpec((None, n_heads, tq, dh), lambda b, si: (b, 0, si, 0)),
                pl.BlockSpec((None, n_heads, tq, dh), lambda b, si: (b, 0, si, 0)),
            ],
        ),
        compiler_params=pltpu.CompilerParams(
            dimension_semantics=("parallel", "parallel"),
            vmem_limit_bytes=vmem_limit_bytes,
        ),
        cost_estimate=proj_cost,
    )(x, wqkv_t, bqkv2)

    # -------- pass 2: flash attention + fused output projection ----------------
    flash_cost = pl.CostEstimate(
        flops=int(B * (4 * S * S * D + 2 * S * D * D)),         # QK^T + PV + Wout
        transcendentals=int(B * n_heads * S * S),
        bytes_accessed=int(2 * B * S * D                        # q (bf16, once)
                           + 2 * 2 * B * nq * S * D             # k,v re-read per q tile
                           + 2 * (D * D + D)                    # Wout/bout bf16
                           + x.dtype.itemsize * B * S * D))     # output
    out = pl.pallas_call(
        functools.partial(_flash_attn_kernel, n_heads=n_heads),
        out_shape=jax.ShapeDtypeStruct((B, S, D), x.dtype),
        grid_spec=pltpu.PrefetchScalarGridSpec(
            num_scalar_prefetch=0,
            grid=(B, nq, nk),
            in_specs=[
                pl.BlockSpec((None, n_heads, tq, dh), lambda b, qi, ki: (b, 0, qi, 0)),
                pl.BlockSpec((None, n_heads, tk, dh), lambda b, qi, ki: (b, 0, ki, 0)),
                pl.BlockSpec((None, n_heads, tk, dh), lambda b, qi, ki: (b, 0, ki, 0)),
                wspec((n_heads, dh, D), lambda b, qi, ki: (0, 0, 0)),     # Wout (head-major)
                wspec((1, D), lambda b, qi, ki: (0, 0)),                  # bout
            ],
            out_specs=pl.BlockSpec((None, tq, D), lambda b, qi, ki: (b, qi, 0)),
            scratch_shapes=[
                pltpu.VMEM((n_heads, tq, 1), jnp.float32),    # running max per head
                pltpu.VMEM((n_heads, tq, 1), jnp.float32),    # running sum per head
                pltpu.VMEM((n_heads, tq, dh), jnp.float32),   # output accumulator
            ],
        ),
        compiler_params=pltpu.CompilerParams(
            dimension_semantics=("parallel", "parallel", "arbitrary"),
            vmem_limit_bytes=vmem_limit_bytes,
        ),
        cost_estimate=flash_cost,
    )(q, k, v, wout_h, bout2)
    return out


def multi_head_attention(x, params, *, n_heads, q_block=None, kv_block=None):
    """x: (B, S, D) activations; params from prepare_mha_params()."""
    B, S, D = x.shape
    assert D % n_heads == 0
    tq_def, tk_def, vmem_limit = _chip_defaults()
    tq = min(q_block or tq_def, S)
    tk = min(kv_block or tk_def, S)
    assert S % tq == 0 and S % tk == 0, "sequence must divide by tile sizes"
    # Keep at least 2 units of parallel (B, q-tile) work so both v7x TensorCores
    # get something to do (free on 1-TC chips).
    while (B * (S // tq) < 2 and tq > 8 and tq % 2 == 0
           and S % (tq // 2) == 0 and (tq // 2) % 8 == 0):
        tq //= 2
    try:
        return _mha_forward(x, params, n_heads, tq, tk, vmem_limit, True)
    except Exception:
        # pipeline_mode=pl.Buffered(1) (single-buffered constant weight blocks)
        # not supported by this jax build -> default double buffering.
        return _mha_forward(x, params, n_heads, tq, tk, vmem_limit, False)


# -----------------------------------------------------------------------------
# Pure-JAX reference (mirror of the PyTorch forward, eval mode, mask=None).
# -----------------------------------------------------------------------------
def _reference(x, wqkv, bqkv, wout, bout, n_heads):
    B, S, D = x.shape
    dh = D // n_heads
    qkv = jnp.einsum('bsd,od->bso', x, wqkv) + bqkv
    q, k, v = qkv[..., :D], qkv[..., D:2 * D], qkv[..., 2 * D:]

    def split(t):
        return t.reshape(B, S, n_heads, dh).transpose(0, 2, 1, 3)    # (B,H,S,dh)

    q, k, v = split(q), split(k), split(v)
    s = jnp.einsum('bhqd,bhkd->bhqk', q, k) / math.sqrt(dh)
    p = jax.nn.softmax(s, axis=-1)
    o = jnp.einsum('bhqk,bhkd->bhqd', p, v)
    o = o.transpose(0, 2, 1, 3).reshape(B, S, D)
    return jnp.einsum('bsd,od->bso', o, wout) + bout


if __name__ == "__main__":
    n_heads = 8
    B, S, D = 2, 8, 32            # batch, seq, hidden; head_dim = 4

    key = jax.random.PRNGKey(0)
    kx, k1, k2, k3, k4 = jax.random.split(key, 5)

    x = jax.random.normal(kx, (B, S, D), dtype=jnp.float32)

    # Deterministic parameter init (PyTorch nn.Linear-style uniform bound).
    bound = 1.0 / math.sqrt(D)
    wqkv = jax.random.uniform(k1, (3 * D, D), minval=-bound, maxval=bound,
                              dtype=jnp.float32)
    bqkv = jax.random.uniform(k2, (3 * D,), minval=-bound, maxval=bound,
                              dtype=jnp.float32)
    wout = jax.random.uniform(k3, (D, D), minval=-bound, maxval=bound,
                              dtype=jnp.float32)
    bout = jax.random.uniform(k4, (D,), minval=-bound, maxval=bound,
                              dtype=jnp.float32)

    # One-time weight layout prep (outside the per-call path).
    params = prepare_mha_params(wqkv, bqkv, wout, bout, n_heads)

    out = multi_head_attention(x, params, n_heads=n_heads)
    out = jax.block_until_ready(out)

    ref = _reference(x, wqkv, bqkv, wout, bout, n_heads)
    assert out.shape == (B, S, D)
    # Tolerance accommodates bf16 operands (f32 accumulation) in all matmuls.
    assert jnp.allclose(out, ref, atol=2e-2, rtol=2e-2), "mismatch vs reference"

    print("KERNEL_OK")
</pallas_src>

<mosaic_0001>
module attributes {stable_mosaic.version = 11 : i64} {
  func.func @_qkv_proj_kernel(%arg0: i32, %arg1: i32, %arg2: memref<1x8x32xf32, #tpu.memory_space<vmem>>, %arg3: memref<32x96xbf16, #tpu.memory_space<vmem>>, %arg4: memref<1x96xbf16, #tpu.memory_space<vmem>>, %arg5: memref<1x8x8x4xbf16, #tpu.memory_space<vmem>>, %arg6: memref<1x8x8x4xbf16, #tpu.memory_space<vmem>>, %arg7: memref<1x8x8x4xbf16, #tpu.memory_space<vmem>>) attributes {dimension_semantics = [#tpu.dimension_semantics<parallel>, #tpu.dimension_semantics<parallel>], iteration_bounds = array<i64: 2, 1>, scalar_prefetch = 0 : i64, scratch_operands = 0 : i64, tpu.core_type = #tpu.core_type<tc>, window_params = [{transform_indices = @transform_0, window_bounds = array<i64: 1, 8, 32>}, {pipeline_mode = #tpu.pipeline_mode<synchronous>, transform_indices = @transform_1, window_bounds = array<i64: 32, 96>}, {pipeline_mode = #tpu.pipeline_mode<synchronous>, transform_indices = @transform_2, window_bounds = array<i64: 1, 96>}, {transform_indices = @transform_3, window_bounds = array<i64: 1, 8, 8, 4>}, {transform_indices = @transform_4, window_bounds = array<i64: 1, 8, 8, 4>}, {transform_indices = @transform_5, window_bounds = array<i64: 1, 8, 8, 4>}]} {
    %c0 = arith.constant 0 : index
    %c0_0 = arith.constant 0 : index
    %c0_1 = arith.constant 0 : index
    %0 = vector.load %arg2[%c0, %c0_0, %c0_1] : memref<1x8x32xf32, #tpu.memory_space<vmem>>, vector<1x8x32xf32>
    %1 = vector.shape_cast %0 : vector<1x8x32xf32> to vector<8x32xf32>
    %2 = arith.truncf %1 : vector<8x32xf32> to vector<8x32xbf16>
    %c0_2 = arith.constant 0 : index
    %c0_3 = arith.constant 0 : index
    %3 = vector.load %arg3[%c0_2, %c0_3] : memref<32x96xbf16, #tpu.memory_space<vmem>>, vector<32x96xbf16>
    %cst = arith.constant dense<0.000000e+00> : vector<8x96xf32>
    %4 = tpu.matmul %2, %3, %cst {dimension_numbers = #tpu.dot_dimension_numbers<[1], [0], [0], [1], [0, 0, 1, 1], [], []>} : vector<8x32xbf16>, vector<32x96xbf16>, vector<8x96xf32> -> vector<8x96xf32>
    %c0_4 = arith.constant 0 : index
    %c0_5 = arith.constant 0 : index
    %5 = vector.load %arg4[%c0_4, %c0_5] : memref<1x96xbf16, #tpu.memory_space<vmem>>, vector<1x96xbf16>
    %6 = arith.extf %5 : vector<1x96xbf16> to vector<1x96xf32>
    %7 = vector.broadcast %6 : vector<1x96xf32> to vector<8x96xf32>
    %8 = arith.addf %4, %7 : vector<8x96xf32>
    %9 = vector.extract_strided_slice %8 {offsets = [0, 0], sizes = [8, 4], strides = [1, 1]} : vector<8x96xf32> to vector<8x4xf32>
    %cst_6 = arith.constant 5.000000e-01 : f32
    %10 = vector.broadcast %cst_6 : f32 to vector<8x4xf32>
    %11 = arith.mulf %9, %10 : vector<8x4xf32>
    %12 = arith.truncf %11 : vector<8x4xf32> to vector<8x4xbf16>
    %c0_7 = arith.constant 0 : index
    %c0_8 = arith.constant 0 : index
    %c0_9 = arith.constant 0 : index
    %c0_10 = arith.constant 0 : index
    %13 = vector.load %arg5[%c0_7, %c0_8, %c0_9, %c0_10] : memref<1x8x8x4xbf16, #tpu.memory_space<vmem>>, vector<1x1x8x4xbf16>
    %14 = vector.shape_cast %13 : vector<1x1x8x4xbf16> to vector<8x4xbf16>
    %15 = vector.shape_cast %12 : vector<8x4xbf16> to vector<1x1x8x4xbf16>
    tpu.vector_store %arg5[%c0_7, %c0_8, %c0_9, %c0_10], %15 {strides = array<i32>} : memref<1x8x8x4xbf16, #tpu.memory_space<vmem>>, vector<1x1x8x4xbf16>,
    %16 = vector.extract_strided_slice %8 {offsets = [0, 32], sizes = [8, 4], strides = [1, 1]} : vector<8x96xf32> to vector<8x4xf32>
    %17 = arith.truncf %16 : vector<8x4xf32> to vector<8x4xbf16>
    %c0_11 = arith.constant 0 : index
    %c0_12 = arith.constant 0 : index
    %c0_13 = arith.constant 0 : index
    %c0_14 = arith.constant 0 : index
    %18 = vector.load %arg6[%c0_11, %c0_12, %c0_13, %c0_14] : memref<1x8x8x4xbf16, #tpu.memory_space<vmem>>, vector<1x1x8x4xbf16>
    %19 = vector.shape_cast %18 : vector<1x1x8x4xbf16> to vector<8x4xbf16>
    %20 = vector.shape_cast %17 : vector<8x4xbf16> to vector<1x1x8x4xbf16>
    tpu.vector_store %arg6[%c0_11, %c0_12, %c0_13, %c0_14], %20 {strides = array<i32>} : memref<1x8x8x4xbf16, #tpu.memory_space<vmem>>, vector<1x1x8x4xbf16>,
    %21 = vector.extract_strided_slice %8 {offsets = [0, 64], sizes = [8, 4], strides = [1, 1]} : vector<8x96xf32> to vector<8x4xf32>
    %22 = arith.truncf %21 : vector<8x4xf32> to vector<8x4xbf16>
    %c0_15 = arith.constant 0 : index
    %c0_16 = arith.constant 0 : index
    %c0_17 = arith.constant 0 : index
    %c0_18 = arith.constant 0 : index
    %23 = vector.load %arg7[%c0_15, %c0_16, %c0_17, %c0_18] : memref<1x8x8x4xbf16, #tpu.memory_space<vmem>>, vector<1x1x8x4xbf16>
    %24 = vector.shape_cast %23 : vector<1x1x8x4xbf16> to vector<8x4xbf16>
    %25 = vector.shape_cast %22 : vector<8x4xbf16> to vector<1x1x8x4xbf16>
    tpu.vector_store %arg7[%c0_15, %c0_16, %c0_17, %c0_18], %25 {strides = array<i32>} : memref<1x8x8x4xbf16, #tpu.memory_space<vmem>>, vector<1x1x8x4xbf16>,
    %26 = vector.extract_strided_slice %8 {offsets = [0, 4], sizes = [8, 4], strides = [1, 1]} : vector<8x96xf32> to vector<8x4xf32>
    %cst_19 = arith.constant 5.000000e-01 : f32
    %27 = vector.broadcast %cst_19 : f32 to vector<8x4xf32>
    %28 = arith.mulf %26, %27 : vector<8x4xf32>
    %29 = arith.truncf %28 : vector<8x4xf32> to vector<8x4xbf16>
    %c0_20 = arith.constant 0 : index
    %c1 = arith.constant 1 : index
    %c0_21 = arith.constant 0 : index
    %c0_22 = arith.constant 0 : index
    %30 = vector.load %arg5[%c0_20, %c1, %c0_21, %c0_22] : memref<1x8x8x4xbf16, #tpu.memory_space<vmem>>, vector<1x1x8x4xbf16>
    %31 = vector.shape_cast %30 : vector<1x1x8x4xbf16> to vector<8x4xbf16>
    %32 = vector.shape_cast %29 : vector<8x4xbf16> to vector<1x1x8x4xbf16>
    tpu.vector_store %arg5[%c0_20, %c1, %c0_21, %c0_22], %32 {strides = array<i32>} : memref<1x8x8x4xbf16, #tpu.memory_space<vmem>>, vector<1x1x8x4xbf16>,
    %33 = vector.extract_strided_slice %8 {offsets = [0, 36], sizes = [8, 4], strides = [1, 1]} : vector<8x96xf32> to vector<8x4xf32>
    %34 = arith.truncf %33 : vector<8x4xf32> to vector<8x4xbf16>
    %c0_23 = arith.constant 0 : index
    %c1_24 = arith.constant 1 : index
    %c0_25 = arith.constant 0 : index
    %c0_26 = arith.constant 0 : index
    %35 = vector.load %arg6[%c0_23, %c1_24, %c0_25, %c0_26] : memref<1x8x8x4xbf16, #tpu.memory_space<vmem>>, vector<1x1x8x4xbf16>
    %36 = vector.shape_cast %35 : vector<1x1x8x4xbf16> to vector<8x4xbf16>
    %37 = vector.shape_cast %34 : vector<8x4xbf16> to vector<1x1x8x4xbf16>
    tpu.vector_store %arg6[%c0_23, %c1_24, %c0_25, %c0_26], %37 {strides = array<i32>} : memref<1x8x8x4xbf16, #tpu.memory_space<vmem>>, vector<1x1x8x4xbf16>,
    %38 = vector.extract_strided_slice %8 {offsets = [0, 68], sizes = [8, 4], strides = [1, 1]} : vector<8x96xf32> to vector<8x4xf32>
    %39 = arith.truncf %38 : vector<8x4xf32> to vector<8x4xbf16>
    %c0_27 = arith.constant 0 : index
    %c1_28 = arith.constant 1 : index
    %c0_29 = arith.constant 0 : index
    %c0_30 = arith.constant 0 : index
    %40 = vector.load %arg7[%c0_27, %c1_28, %c0_29, %c0_30] : memref<1x8x8x4xbf16, #tpu.memory_space<vmem>>, vector<1x1x8x4xbf16>
    %41 = vector.shape_cast %40 : vector<1x1x8x4xbf16> to vector<8x4xbf16>
    %42 = vector.shape_cast %39 : vector<8x4xbf16> to vector<1x1x8x4xbf16>
    tpu.vector_store %arg7[%c0_27, %c1_28, %c0_29, %c0_30], %42 {strides = array<i32>} : memref<1x8x8x4xbf16, #tpu.memory_space<vmem>>, vector<1x1x8x4xbf16>,
    %43 = vector.extract_strided_slice %8 {offsets = [0, 8], sizes = [8, 4], strides = [1, 1]} : vector<8x96xf32> to vector<8x4xf32>
    %cst_31 = arith.constant 5.000000e-01 : f32
    %44 = vector.broadcast %cst_31 : f32 to vector<8x4xf32>
    %45 = arith.mulf %43, %44 : vector<8x4xf32>
    %46 = arith.truncf %45 : vector<8x4xf32> to vector<8x4xbf16>
    %c0_32 = arith.constant 0 : index
    %c2 = arith.constant 2 : index
    %c0_33 = arith.constant 0 : index
    %c0_34 = arith.constant 0 : index
    %47 = vector.load %arg5[%c0_32, %c2, %c0_33, %c0_34] : memref<1x8x8x4xbf16, #tpu.memory_space<vmem>>, vector<1x1x8x4xbf16>
    %48 = vector.shape_cast %47 : vector<1x1x8x4xbf16> to vector<8x4xbf16>
    %49 = vector.shape_cast %46 : vector<8x4xbf16> to vector<1x1x8x4xbf16>
    tpu.vector_store %arg5[%c0_32, %c2, %c0_33, %c0_34], %49 {strides = array<i32>} : memref<1x8x8x4xbf16, #tpu.memory_space<vmem>>, vector<1x1x8x4xbf16>,
    %50 = vector.extract_strided_slice %8 {offsets = [0, 40], sizes = [8, 4], strides = [1, 1]} : vector<8x96xf32> to vector<8x4xf32>
    %51 = arith.truncf %50 : vector<8x4xf32> to vector<8x4xbf16>
    %c0_35 = arith.constant 0 : index
    %c2_36 = arith.constant 2 : index
    %c0_37 = arith.constant 0 : index
    %c0_38 = arith.constant 0 : index
    %52 = vector.load %arg6[%c0_35, %c2_36, %c0_37, %c0_38] : memref<1x8x8x4xbf16, #tpu.memory_space<vmem>>, vector<1x1x8x4xbf16>
    %53 = vector.shape_cast %52 : vector<1x1x8x4xbf16> to vector<8x4xbf16>
    %54 = vector.shape_cast %51 : vector<8x4xbf16> to vector<1x1x8x4xbf16>
    tpu.vector_store %arg6[%c0_35, %c2_36, %c0_37, %c0_38], %54 {strides = array<i32>} : memref<1x8x8x4xbf16, #tpu.memory_space<vmem>>, vector<1x1x8x4xbf16>,
    %55 = vector.extract_strided_slice %8 {offsets = [0, 72], sizes = [8, 4], strides = [1, 1]} : vector<8x96xf32> to vector<8x4xf32>
    %56 = arith.truncf %55 : vector<8x4xf32> to vector<8x4xbf16>
    %c0_39 = arith.constant 0 : index
    %c2_40 = arith.constant 2 : index
    %c0_41 = arith.constant 0 : index
    %c0_42 = arith.constant 0 : index
    %57 = vector.load %arg7[%c0_39, %c2_40, %c0_41, %c0_42] : memref<1x8x8x4xbf16, #tpu.memory_space<vmem>>, vector<1x1x8x4xbf16>
    %58 = vector.shape_cast %57 : vector<1x1x8x4xbf16> to vector<8x4xbf16>
    %59 = vector.shape_cast %56 : vector<8x4xbf16> to vector<1x1x8x4xbf16>
    tpu.vector_store %arg7[%c0_39, %c2_40, %c0_41, %c0_42], %59 {strides = array<i32>} : memref<1x8x8x4xbf16, #tpu.memory_space<vmem>>, vector<1x1x8x4xbf16>,
    %60 = vector.extract_strided_slice %8 {offsets = [0, 12], sizes = [8, 4], strides = [1, 1]} : vector<8x96xf32> to vector<8x4xf32>
    %cst_43 = arith.constant 5.000000e-01 : f32
    %61 = vector.broadcast %cst_43 : f32 to vector<8x4xf32>
    %62 = arith.mulf %60, %61 : vector<8x4xf32>
    %63 = arith.truncf %62 : vector<8x4xf32> to vector<8x4xbf16>
    %c0_44 = arith.constant 0 : index
    %c3 = arith.constant 3 : index
    %c0_45 = arith.constant 0 : index
    %c0_46 = arith.constant 0 : index
    %64 = vector.load %arg5[%c0_44, %c3, %c0_45, %c0_46] : memref<1x8x8x4xbf16, #tpu.memory_space<vmem>>, vector<1x1x8x4xbf16>
    %65 = vector.shape_cast %64 : vector<1x1x8x4xbf16> to vector<8x4xbf16>
    %66 = vector.shape_cast %63 : vector<8x4xbf16> to vector<1x1x8x4xbf16>
    tpu.vector_store %arg5[%c0_44, %c3, %c0_45, %c0_46], %66 {strides = array<i32>} : memref<1x8x8x4xbf16, #tpu.memory_space<vmem>>, vector<1x1x8x4xbf16>,
    %67 = vector.extract_strided_slice %8 {offsets = [0, 44], sizes = [8, 4], strides = [1, 1]} : vector<8x96xf32> to vector<8x4xf32>
    %68 = arith.truncf %67 : vector<8x4xf32> to vector<8x4xbf16>
    %c0_47 = arith.constant 0 : index
    %c3_48 = arith.constant 3 : index
    %c0_49 = arith.constant 0 : index
    %c0_50 = arith.constant 0 : index
    %69 = vector.load %arg6[%c0_47, %c3_48, %c0_49, %c0_50] : memref<1x8x8x4xbf16, #tpu.memory_space<vmem>>, vector<1x1x8x4xbf16>
    %70 = vector.shape_cast %69 : vector<1x1x8x4xbf16> to vector<8x4xbf16>
    %71 = vector.shape_cast %68 : vector<8x4xbf16> to vector<1x1x8x4xbf16>
    tpu.vector_store %arg6[%c0_47, %c3_48, %c0_49, %c0_50], %71 {strides = array<i32>} : memref<1x8x8x4xbf16, #tpu.memory_space<vmem>>, vector<1x1x8x4xbf16>,
    %72 = vector.extract_strided_slice %8 {offsets = [0, 76], sizes = [8, 4], strides = [1, 1]} : vector<8x96xf32> to vector<8x4xf32>
    %73 = arith.truncf %72 : vector<8x4xf32> to vector<8x4xbf16>
    %c0_51 = arith.constant 0 : index
    %c3_52 = arith.constant 3 : index
    %c0_53 = arith.constant 0 : index
    %c0_54 = arith.constant 0 : index
    %74 = vector.load %arg7[%c0_51, %c3_52, %c0_53, %c0_54] : memref<1x8x8x4xbf16, #tpu.memory_space<vmem>>, vector<1x1x8x4xbf16>
    %75 = vector.shape_cast %74 : vector<1x1x8x4xbf16> to vector<8x4xbf16>
    %76 = vector.shape_cast %73 : vector<8x4xbf16> to vector<1x1x8x4xbf16>
    tpu.vector_store %arg7[%c0_51, %c3_52, %c0_53, %c0_54], %76 {strides = array<i32>} : memref<1x8x8x4xbf16, #tpu.memory_space<vmem>>, vector<1x1x8x4xbf16>,
    %77 = vector.extract_strided_slice %8 {offsets = [0, 16], sizes = [8, 4], strides = [1, 1]} : vector<8x96xf32> to vector<8x4xf32>
    %cst_55 = arith.constant 5.000000e-01 : f32
    %78 = vector.broadcast %cst_55 : f32 to vector<8x4xf32>
    %79 = arith.mulf %77, %78 : vector<8x4xf32>
    %80 = arith.truncf %79 : vector<8x4xf32> to vector<8x4xbf16>
    %c0_56 = arith.constant 0 : index
    %c4 = arith.constant 4 : index
    %c0_57 = arith.constant 0 : index
    %c0_58 = arith.constant 0 : index
    %81 = vector.load %arg5[%c0_56, %c4, %c0_57, %c0_58] : memref<1x8x8x4xbf16, #tpu.memory_space<vmem>>, vector<1x1x8x4xbf16>
    %82 = vector.shape_cast %81 : vector<1x1x8x4xbf16> to vector<8x4xbf16>
    %83 = vector.shape_cast %80 : vector<8x4xbf16> to vector<1x1x8x4xbf16>
    tpu.vector_store %arg5[%c0_56, %c4, %c0_57, %c0_58], %83 {strides = array<i32>} : memref<1x8x8x4xbf16, #tpu.memory_space<vmem>>, vector<1x1x8x4xbf16>,
    %84 = vector.extract_strided_slice %8 {offsets = [0, 48], sizes = [8, 4], strides = [1, 1]} : vector<8x96xf32> to vector<8x4xf32>
    %85 = arith.truncf %84 : vector<8x4xf32> to vector<8x4xbf16>
    %c0_59 = arith.constant 0 : index
    %c4_60 = arith.constant 4 : index
    %c0_61 = arith.constant 0 : index
    %c0_62 = arith.constant 0 : index
    %86 = vector.load %arg6[%c0_59, %c4_60, %c0_61, %c0_62] : memref<1x8x8x4xbf16, #tpu.memory_space<vmem>>, vector<1x1x8x4xbf16>
    %87 = vector.shape_cast %86 : vector<1x1x8x4xbf16> to vector<8x4xbf16>
    %88 = vector.shape_cast %85 : vector<8x4xbf16> to vector<1x1x8x4xbf16>
    tpu.vector_store %arg6[%c0_59, %c4_60, %c0_61, %c0_62], %88 {strides = array<i32>} : memref<1x8x8x4xbf16, #tpu.memory_space<vmem>>, vector<1x1x8x4xbf16>,
    %89 = vector.extract_strided_slice %8 {offsets = [0, 80], sizes = [8, 4], strides = [1, 1]} : vector<8x96xf32> to vector<8x4xf32>
    %90 = arith.truncf %89 : vector<8x4xf32> to vector<8x4xbf16>
    %c0_63 = arith.constant 0 : index
    %c4_64 = arith.constant 4 : index
    %c0_65 = arith.constant 0 : index
    %c0_66 = arith.constant 0 : index
    %91 = vector.load %arg7[%c0_63, %c4_64, %c0_65, %c0_66] : memref<1x8x8x4xbf16, #tpu.memory_space<vmem>>, vector<1x1x8x4xbf16>
    %92 = vector.shape_cast %91 : vector<1x1x8x4xbf16> to vector<8x4xbf16>
    %93 = vector.shape_cast %90 : vector<8x4xbf16> to vector<1x1x8x4xbf16>
    tpu.vector_store %arg7[%c0_63, %c4_64, %c0_65, %c0_66], %93 {strides = array<i32>} : memref<1x8x8x4xbf16, #tpu.memory_space<vmem>>, vector<1x1x8x4xbf16>,
    %94 = vector.extract_strided_slice %8 {offsets = [0, 20], sizes = [8, 4], strides = [1, 1]} : vector<8x96xf32> to vector<8x4xf32>
    %cst_67 = arith.constant 5.000000e-01 : f32
    %95 = vector.broadcast %cst_67 : f32 to vector<8x4xf32>
    %96 = arith.mulf %94, %95 : vector<8x4xf32>
    %97 = arith.truncf %96 : vector<8x4xf32> to vector<8x4xbf16>
    %c0_68 = arith.constant 0 : index
    %c5 = arith.constant 5 : index
    %c0_69 = arith.constant 0 : index
    %c0_70 = arith.constant 0 : index
    %98 = vector.load %arg5[%c0_68, %c5, %c0_69, %c0_70] : memref<1x8x8x4xbf16, #tpu.memory_space<vmem>>, vector<1x1x8x4xbf16>
    %99 = vector.shape_cast %98 : vector<1x1x8x4xbf16> to vector<8x4xbf16>
    %100 = vector.shape_cast %97 : vector<8x4xbf16> to vector<1x1x8x4xbf16>
    tpu.vector_store %arg5[%c0_68, %c5, %c0_69, %c0_70], %100 {strides = array<i32>} : memref<1x8x8x4xbf16, #tpu.memory_space<vmem>>, vector<1x1x8x4xbf16>,
    %101 = vector.extract_strided_slice %8 {offsets = [0, 52], sizes = [8, 4], strides = [1, 1]} : vector<8x96xf32> to vector<8x4xf32>
    %102 = arith.truncf %101 : vector<8x4xf32> to vector<8x4xbf16>
    %c0_71 = arith.constant 0 : index
    %c5_72 = arith.constant 5 : index
    %c0_73 = arith.constant 0 : index
    %c0_74 = arith.constant 0 : index
    %103 = vector.load %arg6[%c0_71, %c5_72, %c0_73, %c0_74] : memref<1x8x8x4xbf16, #tpu.memory_space<vmem>>, vector<1x1x8x4xbf16>
    %104 = vector.shape_cast %103 : vector<1x1x8x4xbf16> to vector<8x4xbf16>
    %105 = vector.shape_cast %102 : vector<8x4xbf16> to vector<1x1x8x4xbf16>
    tpu.vector_store %arg6[%c0_71, %c5_72, %c0_73, %c0_74], %105 {strides = array<i32>} : memref<1x8x8x4xbf16, #tpu.memory_space<vmem>>, vector<1x1x8x4xbf16>,
    %106 = vector.extract_strided_slice %8 {offsets = [0, 84], sizes = [8, 4], strides = [1, 1]} : vector<8x96xf32> to vector<8x4xf32>
    %107 = arith.truncf %106 : vector<8x4xf32> to vector<8x4xbf16>
    %c0_75 = arith.constant 0 : index
    %c5_76 = arith.constant 5 : index
    %c0_77 = arith.constant 0 : index
    %c0_78 = arith.constant 0 : index
    %108 = vector.load %arg7[%c0_75, %c5_76, %c0_77, %c0_78] : memref<1x8x8x4xbf16, #tpu.memory_space<vmem>>, vector<1x1x8x4xbf16>
    %109 = vector.shape_cast %108 : vector<1x1x8x4xbf16> to vector<8x4xbf16>
    %110 = vector.shape_cast %107 : vector<8x4xbf16> to vector<1x1x8x4xbf16>
    tpu.vector_store %arg7[%c0_75, %c5_76, %c0_77, %c0_78], %110 {strides = array<i32>} : memref<1x8x8x4xbf16, #tpu.memory_space<vmem>>, vector<1x1x8x4xbf16>,
    %111 = vector.extract_strided_slice %8 {offsets = [0, 24], sizes = [8, 4], strides = [1, 1]} : vector<8x96xf32> to vector<8x4xf32>
    %cst_79 = arith.constant 5.000000e-01 : f32
    %112 = vector.broadcast %cst_79 : f32 to vector<8x4xf32>
    %113 = arith.mulf %111, %112 : vector<8x4xf32>
    %114 = arith.truncf %113 : vector<8x4xf32> to vector<8x4xbf16>
    %c0_80 = arith.constant 0 : index
    %c6 = arith.constant 6 : index
    %c0_81 = arith.constant 0 : index
    %c0_82 = arith.constant 0 : index
    %115 = vector.load %arg5[%c0_80, %c6, %c0_81, %c0_82] : memref<1x8x8x4xbf16, #tpu.memory_space<vmem>>, vector<1x1x8x4xbf16>
    %116 = vector.shape_cast %115 : vector<1x1x8x4xbf16> to vector<8x4xbf16>
    %117 = vector.shape_cast %114 : vector<8x4xbf16> to vector<1x1x8x4xbf16>
    tpu.vector_store %arg5[%c0_80, %c6, %c0_81, %c0_82], %117 {strides = array<i32>} : memref<1x8x8x4xbf16, #tpu.memory_space<vmem>>, vector<1x1x8x4xbf16>,
    %118 = vector.extract_strided_slice %8 {offsets = [0, 56], sizes = [8, 4], strides = [1, 1]} : vector<8x96xf32> to vector<8x4xf32>
    %119 = arith.truncf %118 : vector<8x4xf32> to vector<8x4xbf16>
    %c0_83 = arith.constant 0 : index
    %c6_84 = arith.constant 6 : index
    %c0_85 = arith.constant 0 : index
    %c0_86 = arith.constant 0 : index
    %120 = vector.load %arg6[%c0_83, %c6_84, %c0_85, %c0_86] : memref<1x8x8x4xbf16, #tpu.memory_space<vmem>>, vector<1x1x8x4xbf16>
    %121 = vector.shape_cast %120 : vector<1x1x8x4xbf16> to vector<8x4xbf16>
    %122 = vector.shape_cast %119 : vector<8x4xbf16> to vector<1x1x8x4xbf16>
    tpu.vector_store %arg6[%c0_83, %c6_84, %c0_85, %c0_86], %122 {strides = array<i32>} : memref<1x8x8x4xbf16, #tpu.memory_space<vmem>>, vector<1x1x8x4xbf16>,
    %123 = vector.extract_strided_slice %8 {offsets = [0, 88], sizes = [8, 4], strides = [1, 1]} : vector<8x96xf32> to vector<8x4xf32>
    %124 = arith.truncf %123 : vector<8x4xf32> to vector<8x4xbf16>
    %c0_87 = arith.constant 0 : index
    %c6_88 = arith.constant 6 : index
    %c0_89 = arith.constant 0 : index
    %c0_90 = arith.constant 0 : index
    %125 = vector.load %arg7[%c0_87, %c6_88, %c0_89, %c0_90] : memref<1x8x8x4xbf16, #tpu.memory_space<vmem>>, vector<1x1x8x4xbf16>
    %126 = vector.shape_cast %125 : vector<1x1x8x4xbf16> to vector<8x4xbf16>
    %127 = vector.shape_cast %124 : vector<8x4xbf16> to vector<1x1x8x4xbf16>
    tpu.vector_store %arg7[%c0_87, %c6_88, %c0_89, %c0_90], %127 {strides = array<i32>} : memref<1x8x8x4xbf16, #tpu.memory_space<vmem>>, vector<1x1x8x4xbf16>,
    %128 = vector.extract_strided_slice %8 {offsets = [0, 28], sizes = [8, 4], strides = [1, 1]} : vector<8x96xf32> to vector<8x4xf32>
    %cst_91 = arith.constant 5.000000e-01 : f32
    %129 = vector.broadcast %cst_91 : f32 to vector<8x4xf32>
    %130 = arith.mulf %128, %129 : vector<8x4xf32>
    %131 = arith.truncf %130 : vector<8x4xf32> to vector<8x4xbf16>
    %c0_92 = arith.constant 0 : index
    %c7 = arith.constant 7 : index
    %c0_93 = arith.constant 0 : index
    %c0_94 = arith.constant 0 : index
    %132 = vector.load %arg5[%c0_92, %c7, %c0_93, %c0_94] : memref<1x8x8x4xbf16, #tpu.memory_space<vmem>>, vector<1x1x8x4xbf16>
    %133 = vector.shape_cast %132 : vector<1x1x8x4xbf16> to vector<8x4xbf16>
    %134 = vector.shape_cast %131 : vector<8x4xbf16> to vector<1x1x8x4xbf16>
    tpu.vector_store %arg5[%c0_92, %c7, %c0_93, %c0_94], %134 {strides = array<i32>} : memref<1x8x8x4xbf16, #tpu.memory_space<vmem>>, vector<1x1x8x4xbf16>,
    %135 = vector.extract_strided_slice %8 {offsets = [0, 60], sizes = [8, 4], strides = [1, 1]} : vector<8x96xf32> to vector<8x4xf32>
    %136 = arith.truncf %135 : vector<8x4xf32> to vector<8x4xbf16>
    %c0_95 = arith.constant 0 : index
    %c7_96 = arith.constant 7 : index
    %c0_97 = arith.constant 0 : index
    %c0_98 = arith.constant 0 : index
    %137 = vector.load %arg6[%c0_95, %c7_96, %c0_97, %c0_98] : memref<1x8x8x4xbf16, #tpu.memory_space<vmem>>, vector<1x1x8x4xbf16>
    %138 = vector.shape_cast %137 : vector<1x1x8x4xbf16> to vector<8x4xbf16>
    %139 = vector.shape_cast %136 : vector<8x4xbf16> to vector<1x1x8x4xbf16>
    tpu.vector_store %arg6[%c0_95, %c7_96, %c0_97, %c0_98], %139 {strides = array<i32>} : memref<1x8x8x4xbf16, #tpu.memory_space<vmem>>, vector<1x1x8x4xbf16>,
    %140 = vector.extract_strided_slice %8 {offsets = [0, 92], sizes = [8, 4], strides = [1, 1]} : vector<8x96xf32> to vector<8x4xf32>
    %141 = arith.truncf %140 : vector<8x4xf32> to vector<8x4xbf16>
    %c0_99 = arith.constant 0 : index
    %c7_100 = arith.constant 7 : index
    %c0_101 = arith.constant 0 : index
    %c0_102 = arith.constant 0 : index
    %142 = vector.load %arg7[%c0_99, %c7_100, %c0_101, %c0_102] : memref<1x8x8x4xbf16, #tpu.memory_space<vmem>>, vector<1x1x8x4xbf16>
    %143 = vector.shape_cast %142 : vector<1x1x8x4xbf16> to vector<8x4xbf16>
    %144 = vector.shape_cast %141 : vector<8x4xbf16> to vector<1x1x8x4xbf16>
    tpu.vector_store %arg7[%c0_99, %c7_100, %c0_101, %c0_102], %144 {strides = array<i32>} : memref<1x8x8x4xbf16, #tpu.memory_space<vmem>>, vector<1x1x8x4xbf16>,
    return
  }
  func.func @transform_0(%arg0: i32, %arg1: i32) -> (i32, i32, i32) {
    %c0_i32 = arith.constant 0 : i32
    %c0_i32_0 = arith.constant 0 : i32
    return %arg0, %arg1, %c0_i32 : i32, i32, i32
  }
  func.func @transform_1(%arg0: i32, %arg1: i32) -> (i32, i32) {
    %c0_i32 = arith.constant 0 : i32
    %c0_i32_0 = arith.constant 0 : i32
    %c0_i32_1 = arith.constant 0 : i32
    return %c0_i32, %c0_i32_0 : i32, i32
  }
  func.func @transform_2(%arg0: i32, %arg1: i32) -> (i32, i32) {
    %c0_i32 = arith.constant 0 : i32
    %c0_i32_0 = arith.constant 0 : i32
    %c0_i32_1 = arith.constant 0 : i32
    return %c0_i32, %c0_i32_0 : i32, i32
  }
  func.func @transform_3(%arg0: i32, %arg1: i32) -> (i32, i32, i32, i32) {
    %c0_i32 = arith.constant 0 : i32
    %c0_i32_0 = arith.constant 0 : i32
    %c0_i32_1 = arith.constant 0 : i32
    return %arg0, %c0_i32, %arg1, %c0_i32_0 : i32, i32, i32, i32
  }
  func.func @transform_4(%arg0: i32, %arg1: i32) -> (i32, i32, i32, i32) {
    %c0_i32 = arith.constant 0 : i32
    %c0_i32_0 = arith.constant 0 : i32
    %c0_i32_1 = arith.constant 0 : i32
    return %arg0, %c0_i32, %arg1, %c0_i32_0 : i32, i32, i32, i32
  }
  func.func @transform_5(%arg0: i32, %arg1: i32) -> (i32, i32, i32, i32) {
    %c0_i32 = arith.constant 0 : i32
    %c0_i32_0 = arith.constant 0 : i32
    %c0_i32_1 = arith.constant 0 : i32
    return %arg0, %c0_i32, %arg1, %c0_i32_0 : i32, i32, i32, i32
  }
}

module attributes {stable_mosaic.version = 11 : i64} {
  func.func @_qkv_proj_kernel(%arg0: i32, %arg1: i32, %arg2: memref<1x8x32xf32, #tpu.memory_space<vmem>>, %arg3: memref<32x96xbf16, #tpu.memory_space<vmem>>, %arg4: memref<1x96xbf16, #tpu.memory_space<vmem>>, %arg5: memref<1x8x8x4xbf16, #tpu.memory_space<vmem>>, %arg6: memref<1x8x8x4xbf16, #tpu.memory_space<vmem>>, %arg7: memref<1x8x8x4xbf16, #tpu.memory_space<vmem>>) attributes {dimension_semantics = [#tpu.dimension_semantics<parallel>, #tpu.dimension_semantics<parallel>], iteration_bounds = array<i64: 2, 1>, scalar_prefetch = 0 : i64, scratch_operands = 0 : i64, tpu.core_type = #tpu.core_type<tc>, window_params = [{transform_indices = @transform_0, window_bounds = array<i64: 1, 8, 32>}, {pipeline_mode = #tpu.pipeline_mode<synchronous>, transform_indices = @transform_1, window_bounds = array<i64: 32, 96>}, {pipeline_mode = #tpu.pipeline_mode<synchronous>, transform_indices = @transform_2, window_bounds = array<i64: 1, 96>}, {transform_indices = @transform_3, window_bounds = array<i64: 1, 8, 8, 4>}, {transform_indices = @transform_4, window_bounds = array<i64: 1, 8, 8, 4>}, {transform_indices = @transform_5, window_bounds = array<i64: 1, 8, 8, 4>}]} {
    %c0 = arith.constant 0 : index
    %c0_0 = arith.constant 0 : index
    %c0_1 = arith.constant 0 : index
    %0 = vector.load %arg2[%c0, %c0_0, %c0_1] : memref<1x8x32xf32, #tpu.memory_space<vmem>>, vector<1x8x32xf32>
    %1 = vector.shape_cast %0 : vector<1x8x32xf32> to vector<8x32xf32>
    %2 = arith.truncf %1 : vector<8x32xf32> to vector<8x32xbf16>
    %c0_2 = arith.constant 0 : index
    %c0_3 = arith.constant 0 : index
    %3 = vector.load %arg3[%c0_2, %c0_3] : memref<32x96xbf16, #tpu.memory_space<vmem>>, vector<32x96xbf16>
    %cst = arith.constant dense<0.000000e+00> : vector<8x96xf32>
    %4 = tpu.matmul %2, %3, %cst {dimension_numbers = #tpu.dot_dimension_numbers<[1], [0], [0], [1], [0, 0, 1, 1], [], []>} : vector<8x32xbf16>, vector<32x96xbf16>, vector<8x96xf32> -> vector<8x96xf32>
    %c0_4 = arith.constant 0 : index
    %c0_5 = arith.constant 0 : index
    %5 = vector.load %arg4[%c0_4, %c0_5] : memref<1x96xbf16, #tpu.memory_space<vmem>>, vector<1x96xbf16>
    %6 = arith.extf %5 : vector<1x96xbf16> to vector<1x96xf32>
    %7 = vector.broadcast %6 : vector<1x96xf32> to vector<8x96xf32>
    %8 = arith.addf %4, %7 : vector<8x96xf32>
    %9 = vector.extract_strided_slice %8 {offsets = [0, 0], sizes = [8, 4], strides = [1, 1]} : vector<8x96xf32> to vector<8x4xf32>
    %cst_6 = arith.constant 5.000000e-01 : f32
    %10 = vector.broadcast %cst_6 : f32 to vector<8x4xf32>
    %11 = arith.mulf %9, %10 : vector<8x4xf32>
    %12 = arith.truncf %11 : vector<8x4xf32> to vector<8x4xbf16>
    %c0_7 = arith.constant 0 : index
    %c0_8 = arith.constant 0 : index
    %c0_9 = arith.constant 0 : index
    %c0_10 = arith.constant 0 : index
    %13 = vector.load %arg5[%c0_7, %c0_8, %c0_9, %c0_10] : memref<1x8x8x4xbf16, #tpu.memory_space<vmem>>, vector<1x1x8x4xbf16>
    %14 = vector.shape_cast %13 : vector<1x1x8x4xbf16> to vector<8x4xbf16>
    %15 = vector.shape_cast %12 : vector<8x4xbf16> to vector<1x1x8x4xbf16>
    tpu.vector_store %arg5[%c0_7, %c0_8, %c0_9, %c0_10], %15 {strides = array<i32>} : memref<1x8x8x4xbf16, #tpu.memory_space<vmem>>, vector<1x1x8x4xbf16>,
    %16 = vector.extract_strided_slice %8 {offsets = [0, 32], sizes = [8, 4], strides = [1, 1]} : vector<8x96xf32> to vector<8x4xf32>
    %17 = arith.truncf %16 : vector<8x4xf32> to vector<8x4xbf16>
    %c0_11 = arith.constant 0 : index
    %c0_12 = arith.constant 0 : index
    %c0_13 = arith.constant 0 : index
    %c0_14 = arith.constant 0 : index
    %18 = vector.load %arg6[%c0_11, %c0_12, %c0_13, %c0_14] : memref<1x8x8x4xbf16, #tpu.memory_space<vmem>>, vector<1x1x8x4xbf16>
    %19 = vector.shape_cast %18 : vector<1x1x8x4xbf16> to vector<8x4xbf16>
    %20 = vector.shape_cast %17 : vector<8x4xbf16> to vector<1x1x8x4xbf16>
    tpu.vector_store %arg6[%c0_11, %c0_12, %c0_13, %c0_14], %20 {strides = array<i32>} : memref<1x8x8x4xbf16, #tpu.memory_space<vmem>>, vector<1x1x8x4xbf16>,
    %21 = vector.extract_strided_slice %8 {offsets = [0, 64], sizes = [8, 4], strides = [1, 1]} : vector<8x96xf32> to vector<8x4xf32>
    %22 = arith.truncf %21 : vector<8x4xf32> to vector<8x4xbf16>
    %c0_15 = arith.constant 0 : index
    %c0_16 = arith.constant 0 : index
    %c0_17 = arith.constant 0 : index
    %c0_18 = arith.constant 0 : index
    %23 = vector.load %arg7[%c0_15, %c0_16, %c0_17, %c0_18] : memref<1x8x8x4xbf16, #tpu.memory_space<vmem>>, vector<1x1x8x4xbf16>
    %24 = vector.shape_cast %23 : vector<1x1x8x4xbf16> to vector<8x4xbf16>
    %25 = vector.shape_cast %22 : vector<8x4xbf16> to vector<1x1x8x4xbf16>
    tpu.vector_store %arg7[%c0_15, %c0_16, %c0_17, %c0_18], %25 {strides = array<i32>} : memref<1x8x8x4xbf16, #tpu.memory_space<vmem>>, vector<1x1x8x4xbf16>,
    %26 = vector.extract_strided_slice %8 {offsets = [0, 4], sizes = [8, 4], strides = [1, 1]} : vector<8x96xf32> to vector<8x4xf32>
    %cst_19 = arith.constant 5.000000e-01 : f32
    %27 = vector.broadcast %cst_19 : f32 to vector<8x4xf32>
    %28 = arith.mulf %26, %27 : vector<8x4xf32>
    %29 = arith.truncf %28 : vector<8x4xf32> to vector<8x4xbf16>
    %c0_20 = arith.constant 0 : index
    %c1 = arith.constant 1 : index
    %c0_21 = arith.constant 0 : index
    %c0_22 = arith.constant 0 : index
    %30 = vector.load %arg5[%c0_20, %c1, %c0_21, %c0_22] : memref<1x8x8x4xbf16, #tpu.memory_space<vmem>>, vector<1x1x8x4xbf16>
    %31 = vector.shape_cast %30 : vector<1x1x8x4xbf16> to vector<8x4xbf16>
    %32 = vector.shape_cast %29 : vector<8x4xbf16> to vector<1x1x8x4xbf16>
    tpu.vector_store %arg5[%c0_20, %c1, %c0_21, %c0_22], %32 {strides = array<i32>} : memref<1x8x8x4xbf16, #tpu.memory_space<vmem>>, vector<1x1x8x4xbf16>,
    %33 = vector.extract_strided_slice %8 {offsets = [0, 36], sizes = [8, 4], strides = [1, 1]} : vector<8x96xf32> to vector<8x4xf32>
    %34 = arith.truncf %33 : vector<8x4xf32> to vector<8x4xbf16>
    %c0_23 = arith.constant 0 : index
    %c1_24 = arith.constant 1 : index
    %c0_25 = arith.constant 0 : index
    %c0_26 = arith.constant 0 : index
    %35 = vector.load %arg6[%c0_23, %c1_24, %c0_25, %c0_26] : memref<1x8x8x4xbf16, #tpu.memory_space<vmem>>, vector<1x1x8x4xbf16>
    %36 = vector.shape_cast %35 : vector<1x1x8x4xbf16> to vector<8x4xbf16>
    %37 = vector.shape_cast %34 : vector<8x4xbf16> to vector<1x1x8x4xbf16>
    tpu.vector_store %arg6[%c0_23, %c1_24, %c0_25, %c0_26], %37 {strides = array<i32>} : memref<1x8x8x4xbf16, #tpu.memory_space<vmem>>, vector<1x1x8x4xbf16>,
    %38 = vector.extract_strided_slice %8 {offsets = [0, 68], sizes = [8, 4], strides = [1, 1]} : vector<8x96xf32> to vector<8x4xf32>
    %39 = arith.truncf %38 : vector<8x4xf32> to vector<8x4xbf16>
    %c0_27 = arith.constant 0 : index
    %c1_28 = arith.constant 1 : index
    %c0_29 = arith.constant 0 : index
    %c0_30 = arith.constant 0 : index
    %40 = vector.load %arg7[%c0_27, %c1_28, %c0_29, %c0_30] : memref<1x8x8x4xbf16, #tpu.memory_space<vmem>>, vector<1x1x8x4xbf16>
    %41 = vector.shape_cast %40 : vector<1x1x8x4xbf16> to vector<8x4xbf16>
    %42 = vector.shape_cast %39 : vector<8x4xbf16> to vector<1x1x8x4xbf16>
    tpu.vector_store %arg7[%c0_27, %c1_28, %c0_29, %c0_30], %42 {strides = array<i32>} : memref<1x8x8x4xbf16, #tpu.memory_space<vmem>>, vector<1x1x8x4xbf16>,
    %43 = vector.extract_strided_slice %8 {offsets = [0, 8], sizes = [8, 4], strides = [1, 1]} : vector<8x96xf32> to vector<8x4xf32>
    %cst_31 = arith.constant 5.000000e-01 : f32
    %44 = vector.broadcast %cst_31 : f32 to vector<8x4xf32>
    %45 = arith.mulf %43, %44 : vector<8x4xf32>
    %46 = arith.truncf %45 : vector<8x4xf32> to vector<8x4xbf16>
    %c0_32 = arith.constant 0 : index
    %c2 = arith.constant 2 : index
    %c0_33 = arith.constant 0 : index
    %c0_34 = arith.constant 0 : index
    %47 = vector.load %arg5[%c0_32, %c2, %c0_33, %c0_34] : memref<1x8x8x4xbf16, #tpu.memory_space<vmem>>, vector<1x1x8x4xbf16>
    %48 = vector.shape_cast %47 : vector<1x1x8x4xbf16> to vector<8x4xbf16>
    %49 = vector.shape_cast %46 : vector<8x4xbf16> to vector<1x1x8x4xbf16>
    tpu.vector_store %arg5[%c0_32, %c2, %c0_33, %c0_34], %49 {strides = array<i32>} : memref<1x8x8x4xbf16, #tpu.memory_space<vmem>>, vector<1x1x8x4xbf16>,
    %50 = vector.extract_strided_slice %8 {offsets = [0, 40], sizes = [8, 4], strides = [1, 1]} : vector<8x96xf32> to vector<8x4xf32>
    %51 = arith.truncf %50 : vector<8x4xf32> to vector<8x4xbf16>
    %c0_35 = arith.constant 0 : index
    %c2_36 = arith.constant 2 : index
    %c0_37 = arith.constant 0 : index
    %c0_38 = arith.constant 0 : index
    %52 = vector.load %arg6[%c0_35, %c2_36, %c0_37, %c0_38] : memref<1x8x8x4xbf16, #tpu.memory_space<vmem>>, vector<1x1x8x4xbf16>
    %53 = vector.shape_cast %52 : vector<1x1x8x4xbf16> to vector<8x4xbf16>
    %54 = vector.shape_cast %51 : vector<8x4xbf16> to vector<1x1x8x4xbf16>
    tpu.vector_store %arg6[%c0_35, %c2_36, %c0_37, %c0_38], %54 {strides = array<i32>} : memref<1x8x8x4xbf16, #tpu.memory_space<vmem>>, vector<1x1x8x4xbf16>,
    %55 = vector.extract_strided_slice %8 {offsets = [0, 72], sizes = [8, 4], strides = [1, 1]} : vector<8x96xf32> to vector<8x4xf32>
    %56 = arith.truncf %55 : vector<8x4xf32> to vector<8x4xbf16>
    %c0_39 = arith.constant 0 : index
    %c2_40 = arith.constant 2 : index
    %c0_41 = arith.constant 0 : index
    %c0_42 = arith.constant 0 : index
    %57 = vector.load %arg7[%c0_39, %c2_40, %c0_41, %c0_42] : memref<1x8x8x4xbf16, #tpu.memory_space<vmem>>, vector<1x1x8x4xbf16>
    %58 = vector.shape_cast %57 : vector<1x1x8x4xbf16> to vector<8x4xbf16>
    %59 = vector.shape_cast %56 : vector<8x4xbf16> to vector<1x1x8x4xbf16>
    tpu.vector_store %arg7[%c0_39, %c2_40, %c0_41, %c0_42], %59 {strides = array<i32>} : memref<1x8x8x4xbf16, #tpu.memory_space<vmem>>, vector<1x1x8x4xbf16>,
    %60 = vector.extract_strided_slice %8 {offsets = [0, 12], sizes = [8, 4], strides = [1, 1]} : vector<8x96xf32> to vector<8x4xf32>
    %cst_43 = arith.constant 5.000000e-01 : f32
    %61 = vector.broadcast %cst_43 : f32 to vector<8x4xf32>
    %62 = arith.mulf %60, %61 : vector<8x4xf32>
    %63 = arith.truncf %62 : vector<8x4xf32> to vector<8x4xbf16>
    %c0_44 = arith.constant 0 : index
    %c3 = arith.constant 3 : index
    %c0_45 = arith.constant 0 : index
    %c0_46 = arith.constant 0 : index
    %64 = vector.load %arg5[%c0_44, %c3, %c0_45, %c0_46] : memref<1x8x8x4xbf16, #tpu.memory_space<vmem>>, vector<1x1x8x4xbf16>
    %65 = vector.shape_cast %64 : vector<1x1x8x4xbf16> to vector<8x4xbf16>
    %66 = vector.shape_cast %63 : vector<8x4xbf16> to vector<1x1x8x4xbf16>
    tpu.vector_store %arg5[%c0_44, %c3, %c0_45, %c0_46], %66 {strides = array<i32>} : memref<1x8x8x4xbf16, #tpu.memory_space<vmem>>, vector<1x1x8x4xbf16>,
    %67 = vector.extract_strided_slice %8 {offsets = [0, 44], sizes = [8, 4], strides = [1, 1]} : vector<8x96xf32> to vector<8x4xf32>
    %68 = arith.truncf %67 : vector<8x4xf32> to vector<8x4xbf16>
    %c0_47 = arith.constant 0 : index
    %c3_48 = arith.constant 3 : index
    %c0_49 = arith.constant 0 : index
    %c0_50 = arith.constant 0 : index
    %69 = vector.load %arg6[%c0_47, %c3_48, %c0_49, %c0_50] : memref<1x8x8x4xbf16, #tpu.memory_space<vmem>>, vector<1x1x8x4xbf16>
    %70 = vector.shape_cast %69 : vector<1x1x8x4xbf16> to vector<8x4xbf16>
    %71 = vector.shape_cast %68 : vector<8x4xbf16> to vector<1x1x8x4xbf16>
    tpu.vector_store %arg6[%c0_47, %c3_48, %c0_49, %c0_50], %71 {strides = array<i32>} : memref<1x8x8x4xbf16, #tpu.memory_space<vmem>>, vector<1x1x8x4xbf16>,
    %72 = vector.extract_strided_slice %8 {offsets = [0, 76], sizes = [8, 4], strides = [1, 1]} : vector<8x96xf32> to vector<8x4xf32>
    %73 = arith.truncf %72 : vector<8x4xf32> to vector<8x4xbf16>
    %c0_51 = arith.constant 0 : index
    %c3_52 = arith.constant 3 : index
    %c0_53 = arith.constant 0 : index
    %c0_54 = arith.constant 0 : index
    %74 = vector.load %arg7[%c0_51, %c3_52, %c0_53, %c0_54] : memref<1x8x8x4xbf16, #tpu.memory_space<vmem>>, vector<1x1x8x4xbf16>
    %75 = vector.shape_cast %74 : vector<1x1x8x4xbf16> to vector<8x4xbf16>
    %76 = vector.shape_cast %73 : vector<8x4xbf16> to vector<1x1x8x4xbf16>
    tpu.vector_store %arg7[%c0_51, %c3_52, %c0_53, %c0_54], %76 {strides = array<i32>} : memref<1x8x8x4xbf16, #tpu.memory_space<vmem>>, vector<1x1x8x4xbf16>,
    %77 = vector.extract_strided_slice %8 {offsets = [0, 16], sizes = [8, 4], strides = [1, 1]} : vector<8x96xf32> to vector<8x4xf32>
    %cst_55 = arith.constant 5.000000e-01 : f32
    %78 = vector.broadcast %cst_55 : f32 to vector<8x4xf32>
    %79 = arith.mulf %77, %78 : vector<8x4xf32>
    %80 = arith.truncf %79 : vector<8x4xf32> to vector<8x4xbf16>
    %c0_56 = arith.constant 0 : index
    %c4 = arith.constant 4 : index
    %c0_57 = arith.constant 0 : index
    %c0_58 = arith.constant 0 : index
    %81 = vector.load %arg5[%c0_56, %c4, %c0_57, %c0_58] : memref<1x8x8x4xbf16, #tpu.memory_space<vmem>>, vector<1x1x8x4xbf16>
    %82 = vector.shape_cast %81 : vector<1x1x8x4xbf16> to vector<8x4xbf16>
    %83 = vector.shape_cast %80 : vector<8x4xbf16> to vector<1x1x8x4xbf16>
    tpu.vector_store %arg5[%c0_56, %c4, %c0_57, %c0_58], %83 {strides = array<i32>} : memref<1x8x8x4xbf16, #tpu.memory_space<vmem>>, vector<1x1x8x4xbf16>,
    %84 = vector.extract_strided_slice %8 {offsets = [0, 48], sizes = [8, 4], strides = [1, 1]} : vector<8x96xf32> to vector<8x4xf32>
    %85 = arith.truncf %84 : vector<8x4xf32> to vector<8x4xbf16>
    %c0_59 = arith.constant 0 : index
    %c4_60 = arith.constant 4 : index
    %c0_61 = arith.constant 0 : index
    %c0_62 = arith.constant 0 : index
    %86 = vector.load %arg6[%c0_59, %c4_60, %c0_61, %c0_62] : memref<1x8x8x4xbf16, #tpu.memory_space<vmem>>, vector<1x1x8x4xbf16>
    %87 = vector.shape_cast %86 : vector<1x1x8x4xbf16> to vector<8x4xbf16>
    %88 = vector.shape_cast %85 : vector<8x4xbf16> to vector<1x1x8x4xbf16>
    tpu.vector_store %arg6[%c0_59, %c4_60, %c0_61, %c0_62], %88 {strides = array<i32>} : memref<1x8x8x4xbf16, #tpu.memory_space<vmem>>, vector<1x1x8x4xbf16>,
    %89 = vector.extract_strided_slice %8 {offsets = [0, 80], sizes = [8, 4], strides = [1, 1]} : vector<8x96xf32> to vector<8x4xf32>
    %90 = arith.truncf %89 : vector<8x4xf32> to vector<8x4xbf16>
    %c0_63 = arith.constant 0 : index
    %c4_64 = arith.constant 4 : index
    %c0_65 = arith.constant 0 : index
    %c0_66 = arith.constant 0 : index
    %91 = vector.load %arg7[%c0_63, %c4_64, %c0_65, %c0_66] : memref<1x8x8x4xbf16, #tpu.memory_space<vmem>>, vector<1x1x8x4xbf16>
    %92 = vector.shape_cast %91 : vector<1x1x8x4xbf16> to vector<8x4xbf16>
    %93 = vector.shape_cast %90 : vector<8x4xbf16> to vector<1x1x8x4xbf16>
    tpu.vector_store %arg7[%c0_63, %c4_64, %c0_65, %c0_66], %93 {strides = array<i32>} : memref<1x8x8x4xbf16, #tpu.memory_space<vmem>>, vector<1x1x8x4xbf16>,
    %94 = vector.extract_strided_slice %8 {offsets = [0, 20], sizes = [8, 4], strides = [1, 1]} : vector<8x96xf32> to vector<8x4xf32>
    %cst_67 = arith.constant 5.000000e-01 : f32
    %95 = vector.broadcast %cst_67 : f32 to vector<8x4xf32>
    %96 = arith.mulf %94, %95 : vector<8x4xf32>
    %97 = arith.truncf %96 : vector<8x4xf32> to vector<8x4xbf16>
    %c0_68 = arith.constant 0 : index
    %c5 = arith.constant 5 : index
    %c0_69 = arith.constant 0 : index
    %c0_70 = arith.constant 0 : index
    %98 = vector.load %arg5[%c0_68, %c5, %c0_69, %c0_70] : memref<1x8x8x4xbf16, #tpu.memory_space<vmem>>, vector<1x1x8x4xbf16>
    %99 = vector.shape_cast %98 : vector<1x1x8x4xbf16> to vector<8x4xbf16>
    %100 = vector.shape_cast %97 : vector<8x4xbf16> to vector<1x1x8x4xbf16>
    tpu.vector_store %arg5[%c0_68, %c5, %c0_69, %c0_70], %100 {strides = array<i32>} : memref<1x8x8x4xbf16, #tpu.memory_space<vmem>>, vector<1x1x8x4xbf16>,
    %101 = vector.extract_strided_slice %8 {offsets = [0, 52], sizes = [8, 4], strides = [1, 1]} : vector<8x96xf32> to vector<8x4xf32>
    %102 = arith.truncf %101 : vector<8x4xf32> to vector<8x4xbf16>
    %c0_71 = arith.constant 0 : index
    %c5_72 = arith.constant 5 : index
    %c0_73 = arith.constant 0 : index
    %c0_74 = arith.constant 0 : index
    %103 = vector.load %arg6[%c0_71, %c5_72, %c0_73, %c0_74] : memref<1x8x8x4xbf16, #tpu.memory_space<vmem>>, vector<1x1x8x4xbf16>
    %104 = vector.shape_cast %103 : vector<1x1x8x4xbf16> to vector<8x4xbf16>
    %105 = vector.shape_cast %102 : vector<8x4xbf16> to vector<1x1x8x4xbf16>
    tpu.vector_store %arg6[%c0_71, %c5_72, %c0_73, %c0_74], %105 {strides = array<i32>} : memref<1x8x8x4xbf16, #tpu.memory_space<vmem>>, vector<1x1x8x4xbf16>,
    %106 = vector.extract_strided_slice %8 {offsets = [0, 84], sizes = [8, 4], strides = [1, 1]} : vector<8x96xf32> to vector<8x4xf32>
    %107 = arith.truncf %106 : vector<8x4xf32> to vector<8x4xbf16>
    %c0_75 = arith.constant 0 : index
    %c5_76 = arith.constant 5 : index
    %c0_77 = arith.constant 0 : index
    %c0_78 = arith.constant 0 : index
    %108 = vector.load %arg7[%c0_75, %c5_76, %c0_77, %c0_78] : memref<1x8x8x4xbf16, #tpu.memory_space<vmem>>, vector<1x1x8x4xbf16>
    %109 = vector.shape_cast %108 : vector<1x1x8x4xbf16> to vector<8x4xbf16>
    %110 = vector.shape_cast %107 : vector<8x4xbf16> to vector<1x1x8x4xbf16>
    tpu.vector_store %arg7[%c0_75, %c5_76, %c0_77, %c0_78], %110 {strides = array<i32>} : memref<1x8x8x4xbf16, #tpu.memory_space<vmem>>, vector<1x1x8x4xbf16>,
    %111 = vector.extract_strided_slice %8 {offsets = [0, 24], sizes = [8, 4], strides = [1, 1]} : vector<8x96xf32> to vector<8x4xf32>
    %cst_79 = arith.constant 5.000000e-01 : f32
    %112 = vector.broadcast %cst_79 : f32 to vector<8x4xf32>
    %113 = arith.mulf %111, %112 : vector<8x4xf32>
    %114 = arith.truncf %113 : vector<8x4xf32> to vector<8x4xbf16>
    %c0_80 = arith.constant 0 : index
    %c6 = arith.constant 6 : index
    %c0_81 = arith.constant 0 : index
    %c0_82 = arith.constant 0 : index
    %115 = vector.load %arg5[%c0_80, %c6, %c0_81, %c0_82] : memref<1x8x8x4xbf16, #tpu.memory_space<vmem>>, vector<1x1x8x4xbf16>
    %116 = vector.shape_cast %115 : vector<1x1x8x4xbf16> to vector<8x4xbf16>
    %117 = vector.shape_cast %114 : vector<8x4xbf16> to vector<1x1x8x4xbf16>
    tpu.vector_store %arg5[%c0_80, %c6, %c0_81, %c0_82], %117 {strides = array<i32>} : memref<1x8x8x4xbf16, #tpu.memory_space<vmem>>, vector<1x1x8x4xbf16>,
    %118 = vector.extract_strided_slice %8 {offsets = [0, 56], sizes = [8, 4], strides = [1, 1]} : vector<8x96xf32> to vector<8x4xf32>
    %119 = arith.truncf %118 : vector<8x4xf32> to vector<8x4xbf16>
    %c0_83 = arith.constant 0 : index
    %c6_84 = arith.constant 6 : index
    %c0_85 = arith.constant 0 : index
    %c0_86 = arith.constant 0 : index
    %120 = vector.load %arg6[%c0_83, %c6_84, %c0_85, %c0_86] : memref<1x8x8x4xbf16, #tpu.memory_space<vmem>>, vector<1x1x8x4xbf16>
    %121 = vector.shape_cast %120 : vector<1x1x8x4xbf16> to vector<8x4xbf16>
    %122 = vector.shape_cast %119 : vector<8x4xbf16> to vector<1x1x8x4xbf16>
    tpu.vector_store %arg6[%c0_83, %c6_84, %c0_85, %c0_86], %122 {strides = array<i32>} : memref<1x8x8x4xbf16, #tpu.memory_space<vmem>>, vector<1x1x8x4xbf16>,
    %123 = vector.extract_strided_slice %8 {offsets = [0, 88], sizes = [8, 4], strides = [1, 1]} : vector<8x96xf32> to vector<8x4xf32>
    %124 = arith.truncf %123 : vector<8x4xf32> to vector<8x4xbf16>
    %c0_87 = arith.constant 0 : index
    %c6_88 = arith.constant 6 : index
    %c0_89 = arith.constant 0 : index
    %c0_90 = arith.constant 0 : index
    %125 = vector.load %arg7[%c0_87, %c6_88, %c0_89, %c0_90] : memref<1x8x8x4xbf16, #tpu.memory_space<vmem>>, vector<1x1x8x4xbf16>
    %126 = vector.shape_cast %125 : vector<1x1x8x4xbf16> to vector<8x4xbf16>
    %127 = vector.shape_cast %124 : vector<8x4xbf16> to vector<1x1x8x4xbf16>
    tpu.vector_store %arg7[%c0_87, %c6_88, %c0_89, %c0_90], %127 {strides = array<i32>} : memref<1x8x8x4xbf16, #tpu.memory_space<vmem>>, vector<1x1x8x4xbf16>,
    %128 = vector.extract_strided_slice %8 {offsets = [0, 28], sizes = [8, 4], strides = [1, 1]} : vector<8x96xf32> to vector<8x4xf32>
    %cst_91 = arith.constant 5.000000e-01 : f32
    %129 = vector.broadcast %cst_91 : f32 to vector<8x4xf32>
    %130 = arith.mulf %128, %129 : vector<8x4xf32>
    %131 = arith.truncf %130 : vector<8x4xf32> to vector<8x4xbf16>
    %c0_92 = arith.constant 0 : index
    %c7 = arith.constant 7 : index
    %c0_93 = arith.constant 0 : index
    %c0_94 = arith.constant 0 : index
    %132 = vector.load %arg5[%c0_92, %c7, %c0_93, %c0_94] : memref<1x8x8x4xbf16, #tpu.memory_space<vmem>>, vector<1x1x8x4xbf16>
    %133 = vector.shape_cast %132 : vector<1x1x8x4xbf16> to vector<8x4xbf16>
    %134 = vector.shape_cast %131 : vector<8x4xbf16> to vector<1x1x8x4xbf16>
    tpu.vector_store %arg5[%c0_92, %c7, %c0_93, %c0_94], %134 {strides = array<i32>} : memref<1x8x8x4xbf16, #tpu.memory_space<vmem>>, vector<1x1x8x4xbf16>,
    %135 = vector.extract_strided_slice %8 {offsets = [0, 60], sizes = [8, 4], strides = [1, 1]} : vector<8x96xf32> to vector<8x4xf32>
    %136 = arith.truncf %135 : vector<8x4xf32> to vector<8x4xbf16>
    %c0_95 = arith.constant 0 : index
    %c7_96 = arith.constant 7 : index
    %c0_97 = arith.constant 0 : index
    %c0_98 = arith.constant 0 : index
    %137 = vector.load %arg6[%c0_95, %c7_96, %c0_97, %c0_98] : memref<1x8x8x4xbf16, #tpu.memory_space<vmem>>, vector<1x1x8x4xbf16>
    %138 = vector.shape_cast %137 : vector<1x1x8x4xbf16> to vector<8x4xbf16>
    %139 = vector.shape_cast %136 : vector<8x4xbf16> to vector<1x1x8x4xbf16>
    tpu.vector_store %arg6[%c0_95, %c7_96, %c0_97, %c0_98], %139 {strides = array<i32>} : memref<1x8x8x4xbf16, #tpu.memory_space<vmem>>, vector<1x1x8x4xbf16>,
    %140 = vector.extract_strided_slice %8 {offsets = [0, 92], sizes = [8, 4], strides = [1, 1]} : vector<8x96xf32> to vector<8x4xf32>
    %141 = arith.truncf %140 : vector<8x4xf32> to vector<8x4xbf16>
    %c0_99 = arith.constant 0 : index
    %c7_100 = arith.constant 7 : index
    %c0_101 = arith.constant 0 : index
    %c0_102 = arith.constant 0 : index
    %142 = vector.load %arg7[%c0_99, %c7_100, %c0_101, %c0_102] : memref<1x8x8x4xbf16, #tpu.memory_space<vmem>>, vector<1x1x8x4xbf16>
    %143 = vector.shape_cast %142 : vector<1x1x8x4xbf16> to vector<8x4xbf16>
    %144 = vector.shape_cast %141 : vector<8x4xbf16> to vector<1x1x8x4xbf16>
    tpu.vector_store %arg7[%c0_99, %c7_100, %c0_101, %c0_102], %144 {strides = array<i32>} : memref<1x8x8x4xbf16, #tpu.memory_space<vmem>>, vector<1x1x8x4xbf16>,
    return
  }
  func.func @transform_0(%arg0: i32, %arg1: i32) -> (i32, i32, i32) {
    %c0_i32 = arith.constant 0 : i32
    %c0_i32_0 = arith.constant 0 : i32
    return %arg0, %arg1, %c0_i32 : i32, i32, i32
  }
  func.func @transform_1(%arg0: i32, %arg1: i32) -> (i32, i32) {
    %c0_i32 = arith.constant 0 : i32
    %c0_i32_0 = arith.constant 0 : i32
    %c0_i32_1 = arith.constant 0 : i32
    return %c0_i32, %c0_i32_0 : i32, i32
  }
  func.func @transform_2(%arg0: i32, %arg1: i32) -> (i32, i32) {
    %c0_i32 = arith.constant 0 : i32
    %c0_i32_0 = arith.constant 0 : i32
    %c0_i32_1 = arith.constant 0 : i32
    return %c0_i32, %c0_i32_0 : i32, i32
  }
  func.func @transform_3(%arg0: i32, %arg1: i32) -> (i32, i32, i32, i32) {
    %c0_i32 = arith.constant 0 : i32
    %c0_i32_0 = arith.constant 0 : i32
    %c0_i32_1 = arith.constant 0 : i32
    return %arg0, %c0_i32, %arg1, %c0_i32_0 : i32, i32, i32, i32
  }
  func.func @transform_4(%arg0: i32, %arg1: i32) -> (i32, i32, i32, i32) {
    %c0_i32 = arith.constant 0 : i32
    %c0_i32_0 = arith.constant 0 : i32
    %c0_i32_1 = arith.constant 0 : i32
    return %arg0, %c0_i32, %arg1, %c0_i32_0 : i32, i32, i32, i32
  }
  func.func @transform_5(%arg0: i32, %arg1: i32) -> (i32, i32, i32, i32) {
    %c0_i32 = arith.constant 0 : i32
    %c0_i32_0 = arith.constant 0 : i32
    %c0_i32_1 = arith.constant 0 : i32
    return %arg0, %c0_i32, %arg1, %c0_i32_0 : i32, i32, i32, i32
  }
}

</mosaic_0001>

<bundles_post_ra>
// kernel: tpu_custom_call.1
= control target key start
LH: loop header
LB: loop body
LE: loop exit
PB: predicated region body
PF: predicated region fallthrough
CT: control target
= control target key end

     0   :  { %11 = vsyncpa [#allocation3], 0  ;;  %s1598_s0 = inlined_call_operand.hbm [shape: f32[2,8,32], index: 0, kind: input, shape index: {}]   ;;  %s1599_s1 = inlined_call_operand.hbm [shape: bf16[32,96], index: 1, kind: input, shape index: {}]   ;;  %s1600_s2 = inlined_call_operand.hbm [shape: bf16[1,96], index: 2, kind: input, shape index: {}]   ;;  %s1601_s3 = inlined_call_operand.hbm [shape: bf16[2,8,8,4], index: 3, kind: output, shape index: {0}]   ;;  %s1602_s4 = inlined_call_operand.hbm [shape: bf16[2,8,8,4], index: 4, kind: output, shape index: {1}]   ;;  %s1603_s5 = inlined_call_operand.hbm [shape: bf16[2,8,8,4], index: 5, kind: output, shape index: {2}]  }
   0x1   :  { %13 = vsyncpa [#allocation3 + $0x1], 0 }
   0x2   :  { %14 = vsyncpa [#allocation6], 0 }
   0x3   :  { %15 = vsyncpa [#allocation4], 0 }
   0x4   :  { %17 = vsyncpa [#allocation4 + $0x1], 0 }
   0x5   :  { %18 = vsyncpa [#allocation10], 0 }
   0x6   :  { %20 = vsyncpa [#allocation10 + $0x1], 0  ;;  %s1215_s18 = smov 0   ;;  %s1217_s19 = smov 0  }
   0x7   :  { %s1219_s20 = smov 0   ;;  %s1221_s21 = smov 0  }
   0x8   :  { %s1223_s22 = smov 0   ;;  %s1225_s23 = smov 0  }
   0x9 LB: > { %s1246_s24 = sadd.s32 4294967295, %s1149_s23   ;;  %s1607_s25 = sadd.s32 4294967294, %s1149_s23   ;;  %s1149_s23 = sphi %s1225_s23, %s26_s23   ;;  %s1145_s22 = sphi %s1223_s22, %s1628_s22   ;;  %s1141_s21 = sphi %s1221_s21, %s1627_s21   ;;  %s1137_s20 = sphi %s1219_s20, %s1626_s20   ;;  %s1133_s19 = sphi %s1217_s19, %s1625_s19   ;;  %s1129_s18 = sphi %s1215_s18, %s1624_s18  }
   0xa   : > { %p60_p0 = scmp.ne.s32.totalorder %s1133_s19, %s1129_s18  ;;  %p1604_p1 = scmp.eq.s32.totalorder %s1246_s24, 0 }
   0xb   : > { %p134_p3 = scmp.eq.s32.totalorder %s1607_s25, 1  ;;  %p728_p5 = scmp.ge.s32.totalorder %s1149_s23, 1 }
   0xc   : > { %p1257_p4 = por %p1604_p1, %p60_p0  ;;  %p197_p7 = scmp.lt.s32.totalorder %s1149_s23, 3 }
   0xd   : > { %p1262_p6 = por %p134_p3, %p60_p0  ;;  %s1151_s29 = smov [#allocation5]  }
   0xe   : > { %s1608_s26 = scalar_select %p1257_p4, 1, 0 }
   0xf   : > { %s1609_s27 = scalar_select %p1262_p6, 1, 0 }
  0x10   : > { %p1267_p8 = pnand %p728_p5, %p197_p7  ;;  %s209_s30 = sshll.u32 %s1151_s29, 4  ;;  %s1271_s30 = int_to_ptr.vmem [resolvable:$true] %s209_s30 }
  0x11   : > { %s1152_s7 = smov [#allocation7]   ;;  %s917_s11 = scalar_lea.hbm %s1599_s1, 256 }
  0x12   : > { %p810_p9 = pneg %p1267_p8  ;;  %s223_s8 = sshll.u32 %s1152_s7, 4  ;;  %s1282_s8 = int_to_ptr.vmem [resolvable:$true] %s223_s8 }
  0x13   : > { %p918_p12 = scmp.ne.s32.totalorder %s1599_s1, %s917_s11  ;;  %p924_p5 = scmp.lt.u32.totalorder %s917_s11, %s1599_s1 }
  0x14   : > { %p1278_p11 = pnand %p810_p9, %p1604_p1 }
  0x16   : > { %p919_p13 = pneg %p1278_p11 }
  0x18   : > { %p920_p0 = pnand %p919_p13, %p918_p12 }
  0x1a   : > { %p921_p3 = pneg %p920_p0 }
  0x1c   : > { %p926_p7 = pnand %p924_p5, %p921_p3 }
  0x1e   : > { %929 = shalt.err (!%p926_p7)
}
  0x1f   : > { %s930_s16 = scalar_lea.vmem %s1271_s30, 256  ;;  %p938_p2 = scmp.lt.s32.totalorder %s1271_s30, %s1271_s30 }
  0x20   : > { %p931_p9 = scmp.ne.s32.totalorder %s1271_s30, %s930_s16  ;;  %p939_p12 = scmp.lt.s32.totalorder %s930_s16, %s930_s16 }
  0x22   : > { %p933_p10 = pnand %p931_p9, %p919_p13  ;;  %p940_p0 = por %p939_p12, %p938_p2 }
  0x24   : > { %p934_p1 = pneg %p933_p10 }
  0x26   : > { %p941_p6 = pnand %p940_p0, %p934_p1 }
  0x28   : > { %944 = shalt.err (!%p941_p6)
}
  0x29   : > { %s1153_s17 = smov 64   ;;  %s1154_s29 = smov 4  }
  0x2a   : > { %813 = dma.hbm_to_vmem [thread:$0]  (!%p1278_p11), %s1599_s1, 256, %s1271_s30, [#allocation6], %s1153_s17, %s1153_s17, %s1154_s29  }
  0x2b   : > { %s945_s12 = scalar_lea.hbm %s1600_s2, 16 }
  0x2c   : > { %p946_p2 = scmp.ne.s32.totalorder %s1600_s2, %s945_s12  ;;  %p952_p10 = scmp.lt.u32.totalorder %s945_s12, %s1600_s2 }
  0x2e   : > { %p948_p1 = pnand %p946_p2, %p919_p13 }
  0x30   : > { %p949_p6 = pneg %p948_p1 }
  0x32   : > { %p954_p3 = pnand %p952_p10, %p949_p6 }
  0x34   : > { %957 = shalt.err (!%p954_p3)
}
  0x35   : > { %s958_s30 = scalar_lea.vmem %s1282_s8, 16  ;;  %s965_s17 = scalar_lea.vmem %s1282_s8, 32 }
  0x36   : > { %p959_p5 = scmp.ne.s32.totalorder %s1282_s8, %s958_s30  ;;  %p966_p12 = scmp.lt.s32.totalorder %s1282_s8, %s1282_s8 }
  0x37   : > { %p967_p0 = scmp.lt.s32.totalorder %s965_s17, %s958_s30 }
  0x38   : > { %p961_p7 = pnand %p959_p5, %p919_p13 }
  0x39   : > { %p968_p2 = por %p967_p0, %p966_p12 }
  0x3a   : > { %p962_p9 = pneg %p961_p7 }
  0x3c   : > { %p969_p1 = pnand %p968_p2, %p962_p9 }
  0x3e   : > { %972 = shalt.err (!%p969_p1)
}
  0x3f   : > { %816 = dma.hbm_to_vmem [thread:$0]  (!%p1278_p11), %s1600_s2, 16, %s1282_s8, [#allocation6]  }
  0x40   : > { %s38_s9 = sadd.s32 1, %s1145_s22  ;;  %s47_s10 = sadd.s32 1, %s1137_s20 }
  0x41   : > { %p40_p13 = scmp.ge.s32.totalorder %s38_s9, 2  ;;  %p54_p6 = scmp.ne.s32.totalorder %s1137_s20, %s1133_s19 }
  0x42   : > { %p55_p10 = scmp.eq.s32.totalorder %s1149_s23, 0  ;;  %p833_p3 = scmp.lt.s32.totalorder %s1149_s23, 2 }
  0x43   : > { %s1630_s9 = smov (%p40_p13, %s38_s9), 0  ;;  %p1612_p7 = scmp.eq.s32.totalorder %s1246_s24, 1 }
  0x44   : > { %p56_p5 = por %p55_p10, %p54_p6  ;;  %s42_s11 = ssub.s32 %s1145_s22, %s1630_s9 }
  0x45   : > { %p1347_p9 = por %p1612_p7, %p54_p6  ;;  %s234_s12 = sand.u32 1, %s1137_s20  }
  0x46   : > { %p45_p12 = scmp.eq.s32.totalorder %s42_s11, 0  ;;  %s732_s8 = sshll.u32 %s234_s12, 3 }
  0x47   : > { %s1613_s6 = scalar_select %p1347_p9, 1, 0 }
  0x48   : > { %s733_s13 = sshll.u32 %s1145_s22, 7  ;;  %s238_s17 = scalar_lea.vmem [#allocation2], %s732_s8 }
  0x49   : > { %s1356_s14 = scalar_select %p45_p12, %s1137_s20, %s47_s10  }
  0x4a   : > { %s1361_s30 = scalar_lea.hbm %s1598_s0, %s733_s13  ;;  %s246_s29 = sshll.u32 %s238_s17, 4  ;;  %s1369_s29 = int_to_ptr.vmem [resolvable:$true] %s246_s29 }
  0x4b   : > { %p1365_p11 = pnand %p833_p3, %p56_p5  ;;  %s235_s10 = scalar_lea.sflag [#allocation3], %s234_s12 }
  0x4c   : > { %s973_s11 = scalar_lea.hbm %s1361_s30, 128  ;;  %s978_s15 = scalar_lea.hbm %s1598_s0, 256 }
  0x4d   : > { %p974_p0 = scmp.ne.s32.totalorder %s1361_s30, %s973_s11  ;;  %p975_p2 = pneg %p1365_p11 }
  0x4e   : > { %p979_p6 = scmp.lt.u32.totalorder %s1361_s30, %s1598_s0  ;;  %p980_p10 = scmp.lt.u32.totalorder %s978_s15, %s973_s11 }
  0x4f   : > { %p976_p1 = pnand %p975_p2, %p974_p0  ;;  %p982_p5 = scmp.lt.u32.totalorder %s973_s11, %s1361_s30 }
  0x50   : > { %p981_p3 = por %p980_p10, %p979_p6 }
  0x51   : > { %p977_p13 = pneg %p976_p1 }
  0x52   : > { %p983_p7 = por %p982_p5, %p981_p3 }
  0x54   : > { %p984_p12 = pnand %p983_p7, %p977_p13 }
  0x56   : > { %987 = shalt.err (!%p984_p12)
}
  0x57   : > { %s988_s12 = scalar_lea.vmem %s1369_s29, 128  ;;  %s1155_s8 = smov [#allocation2]  }
  0x58   : > { %p989_p0 = scmp.ne.s32.totalorder %s1369_s29, %s988_s12  ;;  %s993_s13 = sshll.u32 %s1155_s8, 4  ;;  %s994_s13 = int_to_ptr.vmem [resolvable:$false] %s993_s13 }
  0x59   : > { %s995_s16 = scalar_lea.vmem %s994_s13, 256  ;;  %p996_p4 = scmp.lt.s32.totalorder %s1369_s29, %s994_s13 }
  0x5a   : > { %p991_p1 = pnand %p989_p0, %p975_p2  ;;  %p997_p6 = scmp.lt.s32.totalorder %s995_s16, %s988_s12 }
  0x5c   : > { %p992_p9 = pneg %p991_p1  ;;  %p998_p10 = por %p997_p6, %p996_p4 }
  0x5e   : > { %p999_p3 = pnand %p998_p10, %p992_p9 }
  0x60   : > { %1002 = shalt.err (!%p999_p3)
}
  0x61   : > { %820 = dma.hbm_to_vmem [thread:$0]  (!%p1365_p11), %s1361_s30, 128, %s1369_s29, %s235_s10  }
  0x62   : > { %255 = sbr.rel (%p1267_p8) target bundleno = 537 (0x219), region = 32  ;;  %s1399_s11 = sand.u32 (!%p1267_p8), 1, %s1133_s19  }
  0x63   : > { %s735_s15 = sshll.u32 (!%p1267_p8), %s1399_s11, 3  ;;  %s258_s17 = scalar_lea.sflag (!%p1267_p8), [#allocation3], %s1399_s11 }
  0x64   : > { %s261_s12 = scalar_lea.vmem (!%p1267_p8), [#allocation2], %s735_s15  ;;  %p1615_p4 = scmp.ne.s32.totalorder (!%p1267_p8), %s1608_s26, 0 }
  0x69   : > { %1112 = dma.done.wait (%p1615_p4), %s258_s17, 128  }
  0x6a   : > { %1114 = vsyncadd (%p1615_p4), %s258_s17, 4294967168  ;;  %p1616_p9 = scmp.eq.s32.totalorder %s1246_s24, 0 }
  0x6c   : > { %1116 = dma.done.wait (%p1616_p9), [#allocation6], 272   ;;  %p1617_p11 = pmov %p1616_p9 }
  0x6d   : > { %v1156_v0 = vmov 0.0   ;;  %vm1157_vm0 = vmmov 0   ;;  %v915_v1 = vld [vmem:[#allocation5] sm:$0xff]   ;;  %v916_v2 = vld [vmem:[#allocation5 + $0x8] sm:$0xff]   ;;  %v307_v3 = vld [vmem:[%s261_s12] sm:$0xff]  ;;  %vm331_vm1 = vcmask 261120   ;;  %v315_v5 = vlaneseq }
  0x6e   : > { %1118 = vsyncadd (%p1617_p11), [#allocation6], 4294967024  ;;  %786 = vmatprep.subr.bf16.mxu0 %v1156_v0  ;;  %790 = vmatprep.mubr.msk.bf16.mxu0 %vm1157_vm0, %v1156_v0  ;;  %v308_v4 = vpack.c.bf16 %v307_v3, %v307_v3  ;;  %v313_v7 = vld [vmem:[#allocation7] sm:$0x1]  ;;  %s1412_s26 = sshll.u32 %s1399_s11, 5  ;;  %vm377_vm2 = vcmask 27648  }
  0x6f   : > { %787 = vmatpush3.bf16.msra.mxu0 %v915_v1  ;;  %v316_v6 = vshrl.u32 %v315_v5, 7  ;;  %v314_v8 = vunpack.c.l.bf16 %v313_v7  ;;  %s1158_s28 = smov 88   ;;  %s1159_s30 = smov 96  }
  0x70   : > { %788 = vmatprep.subr.bf16.mxu0 %v1156_v0  ;;  %s1415_s29 = scalar_lea.vmem [#allocation8], %s1412_s26  ;;  %s1160_s7 = smov 84  }
  0x71   : > { %v317_v9 = vsub.s32 0, %v316_v6  ;;  %s1161_s10 = smov 92   ;;  %s1162_s8 = smov 76  }
  0x72   : > { %s1163_s13 = smov 80   ;;  %s1164_s16 = smov 68  }
  0x73   : > { %789 = vmatpush3.bf16.msra.mxu0 %v916_v2  ;;  %v318_v10 = vrot.slane %v314_v8, %v317_v9  ;;  %s1165_s15 = smov 72   ;;  %s1166_s17 = smov 64  }
  0x74   : > { %s1167_s12 = smov 124   ;;  %s1176_s25 = smov 44  }
  0x75   : > { %p1618_p2 = scmp.ne.s32.totalorder %s1613_s6, 0 }
  0x76   : > { %791 = vmatmul.mubr.msk.bf16.vlgmr.msra.gmra.mrb[0].mxu0 %vm331_vm1, %v308_v4 }
 0x149   : > { %v369_v11 = vpop.f32.mrb[0].mxu0 }
 0x14a   : > { %v370_v12 = vadd.f32 %v369_v11, %v318_v10  ;;  %v792_v13 = vpop.f32.mrb[1].mxu0 }
 0x14b   : > { %v372_v14 = vpop.f32.mrb[2].mxu0 }
 0x14c   : > { %v375_v15 = vmul.f32 0.5, %v370_v12  ;;  %v778_v16 = vpack.c.bf16 %v370_v12, %v370_v12  ;;  %v793_v17 = vpop.f32.mrb[3].mxu0 }
 0x14e   : > { %v376_v18 = vpack.c.bf16 %v375_v15, %v375_v15  ;;  %414 = vrot.lane.b32.xlu1 %v778_v16, %s1158_s28  ;;  %383 = vrot.lane.b32.xlu0 %v778_v16, %s1159_s30  ;;  %s1168_s28 = smov 60   ;;  %s1169_s30 = smov 120  }
 0x150   : > { %378 = vst.msk [vmem:[%s1415_s29] sm:$0xf] %vm377_vm2, %v376_v18 }
 0x152   : > { %429 = vrot.lane.b32.xlu1 %v778_v16, %s1160_s7  ;;  %399 = vrot.lane.b32.xlu0 %v778_v16, %s1161_s10  ;;  %s1170_s7 = smov 56   ;;  %s1171_s10 = smov 116  }
 0x156   : > { %459 = vrot.lane.b32.xlu1 %v778_v16, %s1162_s8  ;;  %444 = vrot.lane.b32.xlu0 %v778_v16, %s1163_s13  ;;  %s1172_s8 = smov 52   ;;  %s1173_s13 = smov 112  }
 0x15a   : > { %489 = vrot.lane.b32.xlu1 %v778_v16, %s1164_s16  ;;  %474 = vrot.lane.b32.xlu0 %v778_v16, %s1165_s15  ;;  %s1174_s16 = smov 48   ;;  %s1175_s15 = smov 108  }
 0x15e   : > { %387 = vrot.lane.b32.xlu0 %v778_v16, %s1166_s17  ;;  %394 = vrot.lane.b32.xlu1 %v376_v18, %s1167_s12  ;;  %s1177_s12 = smov 104  }
 0x162   : > { %404 = vrot.lane.b32.xlu0 %v778_v16, %s1168_s28  ;;  %409 = vrot.lane.b32.xlu1 %v376_v18, %s1169_s30  ;;  %s1178_s28 = smov 40   ;;  %s1179_s30 = smov 100  }
 0x166   : > { %419 = vrot.lane.b32.xlu0 %v778_v16, %s1170_s7  ;;  %424 = vrot.lane.b32.xlu1 %v376_v18, %s1171_s10  ;;  %s1180_s7 = smov 36   ;;  %s298_s10 = scalar_lea.vmem [#allocation9], %s1412_s26 }
 0x16a   : > { %434 = vrot.lane.b32.xlu0 %v778_v16, %s1172_s8  ;;  %439 = vrot.lane.b32.xlu1 %v376_v18, %s1173_s13  ;;  %s504_s8 = sand.u32 1, %s1246_s24   ;;  %s1427_s13 = sshll.u32 %s1141_s21, 9 }
 0x16b   : > { %s1441_s21 = scalar_lea.sflag [#allocation10], %s504_s8 }
 0x16e   : > { %449 = vrot.lane.b32.xlu0 %v778_v16, %s1174_s16  ;;  %454 = vrot.lane.b32.xlu1 %v376_v18, %s1175_s15 }
 0x172   : > { %464 = vrot.lane.b32.xlu0 %v778_v16, %s1176_s25  ;;  %469 = vrot.lane.b32.xlu1 %v376_v18, %s1177_s12  ;;  %s541_s25 = sshll.u32 %s298_s10, 4  ;;  %s1437_s12 = scalar_lea.hbm %s1602_s4, %s1427_s13  ;;  %s1431_s25 = int_to_ptr.vmem [resolvable:$true] %s541_s25 }
 0x173   : > { %s1003_s24 = scalar_lea.vmem %s1431_s25, 512 }
 0x174   : > { %p1004_p8 = scmp.ne.s32.totalorder %s1431_s25, %s1003_s24 }
 0x176   : > { %479 = vrot.lane.b32.xlu0 %v778_v16, %s1178_s28  ;;  %484 = vrot.lane.b32.xlu1 %v376_v18, %s1179_s30  ;;  %p1005_p13 = pnand %p1004_p8, %p1618_p2  ;;  %s1181_s28 = smov [#allocation9]  }
 0x177   : > { %s1007_s30 = sshll.u32 %s1181_s28, 4  ;;  %s1008_s30 = int_to_ptr.vmem [resolvable:$false] %s1007_s30 }
 0x178   : > { %p1006_p5 = pneg %p1005_p13  ;;  %p1010_p7 = scmp.lt.s32.totalorder %s1431_s25, %s1008_s30 }
 0x17a   : > { %494 = vrot.lane.b32.xlu0 %v778_v16, %s1180_s7  ;;  %s1009_s7 = scalar_lea.vmem %s1008_s30, 1024 }
 0x17b   : > { %p1011_p12 = scmp.lt.s32.totalorder %s1009_s7, %s1003_s24 }
 0x17d   : > { %p1012_p0 = por %p1011_p12, %p1010_p7 }
 0x17f   : > { %p1013_p1 = pnand %p1012_p0, %p1006_p5 }
 0x1c0   : > { %v415_v19 = vpop.permute.xlu1 %414  ;;  %v384_v20 = vpop.permute.xlu0 %383 }
 0x1c1   : > { %750 = vst.msk [vmem:[%s298_s10 + $0x8] sm:$0xf] %vm377_vm2, %v415_v19  ;;  %386 = vst.msk [vmem:[%s298_s10] sm:$0xf] %vm377_vm2, %v384_v20 }
 0x1c4   : > { %v430_v21 = vpop.permute.xlu1 %429  ;;  %v400_v22 = vpop.permute.xlu0 %399 }
 0x1c5   : > { %753 = vst.msk [vmem:[%s298_s10 + $0xc] sm:$0xf] %vm377_vm2, %v430_v21  ;;  %747 = vst.msk [vmem:[%s298_s10 + $0x4] sm:$0xf] %vm377_vm2, %v400_v22 }
 0x1c8   : > { %v460_v23 = vpop.permute.xlu1 %459  ;;  %v445_v24 = vpop.permute.xlu0 %444 }
 0x1c9   : > { %759 = vst.msk [vmem:[%s298_s10 + $0x14] sm:$0xf] %vm377_vm2, %v460_v23  ;;  %756 = vst.msk [vmem:[%s298_s10 + $0x10] sm:$0xf] %vm377_vm2, %v445_v24 }
 0x1cc   : > { %v490_v25 = vpop.permute.xlu1 %489  ;;  %v475_v26 = vpop.permute.xlu0 %474 }
 0x1cd   : > { %765 = vst.msk [vmem:[%s298_s10 + $0x1c] sm:$0xf] %vm377_vm2, %v490_v25  ;;  %762 = vst.msk [vmem:[%s298_s10 + $0x18] sm:$0xf] %vm377_vm2, %v475_v26 }
 0x1ce   : > { %1016 = shalt.err (!%p1013_p1)
}
 0x1cf   : > { %s1017_s10 = scalar_lea.hbm %s1437_s12, 512  ;;  %s1021_s15 = scalar_lea.hbm %s1602_s4, 1024 }
 0x1d0   : > { %p1018_p6 = scmp.ne.s32.totalorder %s1437_s12, %s1017_s10  ;;  %p1022_p4 = scmp.lt.u32.totalorder %s1437_s12, %s1602_s4 }
 0x1d1   : > { %p1023_p9 = scmp.lt.u32.totalorder %s1021_s15, %s1017_s10  ;;  %p1025_p8 = scmp.lt.u32.totalorder %s1017_s10, %s1437_s12 }
 0x1d2   : > { %p1019_p10 = pnand %p1018_p6, %p1618_p2 }
 0x1d3   : > { %p1024_p11 = por %p1023_p9, %p1022_p4 }
 0x1d4   : > { %p1020_p3 = pneg %p1019_p10 }
 0x1d5   : > { %p1026_p13 = por %p1025_p8, %p1024_p11 }
 0x1d7   : > { %p1027_p5 = pnand %p1026_p13, %p1020_p3 }
 0x1d9   : > { %1030 = shalt.err (!%p1027_p5)
}
 0x1da   : > { %s1182_s24 = smov 4   ;;  %v388_v27 = vpop.permute.xlu0 %387  ;;  %v395_v28 = vpop.permute.xlu1 %394  ;;  %s1469_s7 = scalar_lea.vmem [#allocation11], %s1412_s26 }
 0x1db   : > { %805 = dma.vmem_to_hbm [thread:$0]  (%p1618_p2), %s1431_s25, 512, %s1437_s12, %s1441_s21, %s1166_s17, %s1166_s17, %s1182_s24  }
 0x1dc   : > { %390 = vst.msk [vmem:[%s1469_s7] sm:$0xf] %vm377_vm2, %v388_v27  ;;  %746 = vst.msk [vmem:[%s1415_s29 + $0x4] sm:$0xf] %vm377_vm2, %v395_v28  ;;  %s524_s26 = sshll.u32 %s1415_s29, 4  ;;  %s1502_s10 = scalar_lea.hbm %s1601_s3, %s1427_s13  ;;  %s1496_s26 = int_to_ptr.vmem [resolvable:$true] %s524_s26 }
 0x1dd   : > { %s1031_s15 = scalar_lea.vmem %s1496_s26, 512  ;;  %s1183_s28 = smov [#allocation8]  }
 0x1de   : > { %v405_v29 = vpop.permute.xlu0 %404  ;;  %v410_v30 = vpop.permute.xlu1 %409  ;;  %p1032_p7 = scmp.ne.s32.totalorder %s1496_s26, %s1031_s15  ;;  %s1035_s30 = sshll.u32 %s1183_s28, 4  ;;  %s1036_s30 = int_to_ptr.vmem [resolvable:$false] %s1035_s30 }
 0x1df   : > { %748 = vst.msk [vmem:[%s1469_s7 + $0x4] sm:$0xf] %vm377_vm2, %v405_v29  ;;  %749 = vst.msk [vmem:[%s1415_s29 + $0x8] sm:$0xf] %vm377_vm2, %v410_v30  ;;  %s1037_s25 = scalar_lea.vmem %s1036_s30, 1024  ;;  %p1038_p1 = scmp.lt.s32.totalorder %s1496_s26, %s1036_s30 }
 0x1e0   : > { %p1033_p12 = pnand %p1032_p7, %p1618_p2  ;;  %p1039_p6 = scmp.lt.s32.totalorder %s1037_s25, %s1031_s15 }
 0x1e2   : > { %v420_v31 = vpop.permute.xlu0 %419  ;;  %v425_v32 = vpop.permute.xlu1 %424  ;;  %p1034_p0 = pneg %p1033_p12  ;;  %p1040_p10 = por %p1039_p6, %p1038_p1 }
 0x1e3   : > { %751 = vst.msk [vmem:[%s1469_s7 + $0x8] sm:$0xf] %vm377_vm2, %v420_v31  ;;  %752 = vst.msk [vmem:[%s1415_s29 + $0xc] sm:$0xf] %vm377_vm2, %v425_v32 }
 0x1e4   : > { %p1041_p3 = pnand %p1040_p10, %p1034_p0 }
 0x1e6   : > { %v435_v33 = vpop.permute.xlu0 %434  ;;  %v440_v34 = vpop.permute.xlu1 %439 }
 0x1e7   : > { %754 = vst.msk [vmem:[%s1469_s7 + $0xc] sm:$0xf] %vm377_vm2, %v435_v33  ;;  %755 = vst.msk [vmem:[%s1415_s29 + $0x10] sm:$0xf] %vm377_vm2, %v440_v34 }
 0x1ea   : > { %v450_v35 = vpop.permute.xlu0 %449  ;;  %v455_v36 = vpop.permute.xlu1 %454 }
 0x1eb   : > { %757 = vst.msk [vmem:[%s1469_s7 + $0x10] sm:$0xf] %vm377_vm2, %v450_v35  ;;  %758 = vst.msk [vmem:[%s1415_s29 + $0x14] sm:$0xf] %vm377_vm2, %v455_v36 }
 0x1ee   : > { %v465_v37 = vpop.permute.xlu0 %464  ;;  %v470_v38 = vpop.permute.xlu1 %469 }
 0x1ef   : > { %760 = vst.msk [vmem:[%s1469_s7 + $0x14] sm:$0xf] %vm377_vm2, %v465_v37  ;;  %761 = vst.msk [vmem:[%s1415_s29 + $0x18] sm:$0xf] %vm377_vm2, %v470_v38 }
 0x1f2   : > { %v480_v39 = vpop.permute.xlu0 %479  ;;  %v485_v40 = vpop.permute.xlu1 %484 }
 0x1f3   : > { %763 = vst.msk [vmem:[%s1469_s7 + $0x18] sm:$0xf] %vm377_vm2, %v480_v39  ;;  %764 = vst.msk [vmem:[%s1415_s29 + $0x1c] sm:$0xf] %vm377_vm2, %v485_v40 }
 0x1f4   : > { %1044 = shalt.err (!%p1041_p3)
}
 0x1f5   : > { %s1045_s29 = scalar_lea.hbm %s1502_s10, 512  ;;  %s1049_s28 = scalar_lea.hbm %s1601_s3, 1024 }
 0x1f6   : > { %p1046_p4 = scmp.ne.s32.totalorder %s1502_s10, %s1045_s29  ;;  %p1050_p8 = scmp.lt.u32.totalorder %s1502_s10, %s1601_s3 }
 0x1f7   : > { %p1051_p13 = scmp.lt.u32.totalorder %s1049_s28, %s1045_s29  ;;  %p1053_p7 = scmp.lt.u32.totalorder %s1045_s29, %s1502_s10 }
 0x1f8   : > { %p1047_p9 = pnand %p1046_p4, %p1618_p2 }
 0x1f9   : > { %p1052_p5 = por %p1051_p13, %p1050_p8 }
 0x1fa   : > { %p1048_p11 = pneg %p1047_p9 }
 0x1fb   : > { %p1054_p12 = por %p1053_p7, %p1052_p5 }
 0x1fd   : > { %p1055_p0 = pnand %p1054_p12, %p1048_p11 }
 0x1ff   : > { %1058 = shalt.err (!%p1055_p0)
}
 0x200   : > { %s1619_s15 = scalar_lea.sflag [#allocation4], %s1399_s11  ;;  %s1620_s8 = sshll.u32 %s1469_s7, 4  ;;  %v495_v41 = vpop.permute.xlu0 %494  ;;  %s1538_s8 = int_to_ptr.vmem [resolvable:$true] %s1620_s8 }
 0x201   : > { %804 = dma.vmem_to_hbm [thread:$0]  (%p1618_p2), %s1496_s26, 512, %s1502_s10, %s1619_s15, %s1166_s17, %s1166_s17, %s1182_s24  }
 0x202   : > { %s1544_s29 = scalar_lea.hbm %s1603_s5, %s1427_s13  ;;  %766 = vst.msk [vmem:[%s1469_s7 + $0x1c] sm:$0xf] %vm377_vm2, %v495_v41  ;;  %s1059_s11 = scalar_lea.vmem %s1538_s8, 512 }
 0x203   : > { %p1060_p1 = scmp.ne.s32.totalorder %s1538_s8, %s1059_s11  ;;  %s1184_s26 = smov [#allocation11]  }
 0x204   : > { %s1063_s10 = sshll.u32 %s1184_s26, 4  ;;  %s1064_s10 = int_to_ptr.vmem [resolvable:$false] %s1063_s10 }
 0x205   : > { %p1061_p6 = pnand %p1060_p1, %p1618_p2  ;;  %s1065_s12 = scalar_lea.vmem %s1064_s10, 1024 }
 0x206   : > { %p1066_p3 = scmp.lt.s32.totalorder %s1538_s8, %s1064_s10  ;;  %p1067_p4 = scmp.lt.s32.totalorder %s1065_s12, %s1059_s11 }
 0x207   : > { %p1062_p10 = pneg %p1061_p6 }
 0x208   : > { %p1068_p9 = por %p1067_p4, %p1066_p3 }
 0x20a   : > { %p1069_p11 = pnand %p1068_p9, %p1062_p10 }
 0x20c   : > { %1072 = shalt.err (!%p1069_p11)
}
 0x20d   : > { %s1073_s13 = scalar_lea.hbm %s1544_s29, 512  ;;  %s1077_s30 = scalar_lea.hbm %s1603_s5, 1024 }
 0x20e   : > { %p1074_p8 = scmp.ne.s32.totalorder %s1544_s29, %s1073_s13  ;;  %p1078_p7 = scmp.lt.u32.totalorder %s1544_s29, %s1603_s5 }
 0x20f   : > { %p1079_p12 = scmp.lt.u32.totalorder %s1077_s30, %s1073_s13  ;;  %p1081_p1 = scmp.lt.u32.totalorder %s1073_s13, %s1544_s29 }
 0x210   : > { %p1075_p13 = pnand %p1074_p8, %p1618_p2 }
 0x211   : > { %p1080_p0 = por %p1079_p12, %p1078_p7 }
 0x212   : > { %p1076_p5 = pneg %p1075_p13 }
 0x213   : > { %p1082_p6 = por %p1081_p1, %p1080_p0 }
 0x215   : > { %p1083_p10 = pnand %p1082_p6, %p1076_p5 }
 0x217   : > { %1086 = shalt.err (!%p1083_p10)
}
 0x218   : > { %806 = dma.vmem_to_hbm [thread:$0]  (%p1618_p2), %s1538_s8, 512, %s1544_s29, %s1441_s21, %s1166_s17, %s1166_s17, %s1182_s24  }
 0x219 PF: > { %s573_s25 = sand.u32 1, %s1129_s18   ;;  %p1621_p3 = scmp.ne.s32.totalorder %s1609_s27, 0 }
 0x21a   : > { %p1622_p4 = scmp.ge.s32.totalorder %s1149_s23, 2  ;;  %s574_s11 = scalar_lea.sflag [#allocation4], %s573_s25 }
 0x21c   : > { %p822_p9 = pnand %p1622_p4, %p1621_p3 }
 0x21e   : > { %1120 = dma.done.wait (!%p822_p9), %s574_s11, 512  }
 0x21f   : > { %1122 = vsyncadd (!%p822_p9), %s574_s11, 4294966784  ;;  %s1623_s6 = sadd.s32 4294967294, %s1149_s23  }
 0x220   : > { %s582_s26 = sand.u32 1, %s1623_s6  }
 0x221   : > { %s583_s10 = scalar_lea.sflag [#allocation10], %s582_s26 }
 0x222   : > { %1124 = dma.done.wait (!%p822_p9), %s583_s10, 1024  }
 0x223   : > { %1126 = vsyncadd (!%p822_p9), %s583_s10, 4294966272  ;;  %s26_s23 = sadd.s32 1, %s1149_s23   ;;  %s1624_s18 = smov %s1133_s19 }
 0x224   : > { %p23_p2 = scmp.ge.s32.totalorder %s26_s23, 4   ;;  %s1625_s19 = smov %s1137_s20 }
 0x225   : > { %s1626_s20 = smov %s1356_s14  ;;  %s1627_s21 = smov %s1145_s22 }
 0x226   : > { %s1628_s22 = smov %s1630_s9  ;;  %25 = sbr.rel (!%p23_p2) target bundleno = 9 (0x9), region = 138 }
 0x22d   :  { %597 = vsyncpa [#allocation3], 1 }
 0x22e   :  { %599 = vsyncpa [#allocation3 + $0x1], 1 }
 0x22f   :  { %600 = vsyncpa [#allocation6], 1 }
 0x230   :  { %601 = vsyncpa [#allocation4], 1 }
 0x231   :  { %603 = vsyncpa [#allocation4 + $0x1], 1 }
 0x232   :  { %604 = vsyncpa [#allocation10], 1 }
 0x233   :  { %606 = vsyncpa [#allocation10 + $0x1], 1 }

// kernel: tpu_custom_call.1
= control target key start
LH: loop header
LB: loop body
LE: loop exit
PB: predicated region body
PF: predicated region fallthrough
CT: control target
= control target key end

     0   :  { %11 = vsyncpa [#allocation3], 0  ;;  %s1598_s0 = inlined_call_operand.hbm [shape: f32[2,8,32], index: 0, kind: input, shape index: {}]   ;;  %s1599_s1 = inlined_call_operand.hbm [shape: bf16[32,96], index: 1, kind: input, shape index: {}]   ;;  %s1600_s2 = inlined_call_operand.hbm [shape: bf16[1,96], index: 2, kind: input, shape index: {}]   ;;  %s1601_s3 = inlined_call_operand.hbm [shape: bf16[2,8,8,4], index: 3, kind: output, shape index: {0}]   ;;  %s1602_s4 = inlined_call_operand.hbm [shape: bf16[2,8,8,4], index: 4, kind: output, shape index: {1}]   ;;  %s1603_s5 = inlined_call_operand.hbm [shape: bf16[2,8,8,4], index: 5, kind: output, shape index: {2}]  }
   0x1   :  { %13 = vsyncpa [#allocation3 + $0x1], 0 }
   0x2   :  { %14 = vsyncpa [#allocation6], 0 }
   0x3   :  { %15 = vsyncpa [#allocation4], 0 }
   0x4   :  { %17 = vsyncpa [#allocation4 + $0x1], 0 }
   0x5   :  { %18 = vsyncpa [#allocation10], 0 }
   0x6   :  { %20 = vsyncpa [#allocation10 + $0x1], 0  ;;  %s1215_s18 = smov 0   ;;  %s1217_s19 = smov 0  }
   0x7   :  { %s1219_s20 = smov 0   ;;  %s1221_s21 = smov 0  }
   0x8   :  { %s1223_s22 = smov 0   ;;  %s1225_s23 = smov 0  }
   0x9 LB: > { %s1246_s24 = sadd.s32 4294967295, %s1149_s23   ;;  %s1607_s25 = sadd.s32 4294967294, %s1149_s23   ;;  %s1149_s23 = sphi %s1225_s23, %s26_s23   ;;  %s1145_s22 = sphi %s1223_s22, %s1628_s22   ;;  %s1141_s21 = sphi %s1221_s21, %s1627_s21   ;;  %s1137_s20 = sphi %s1219_s20, %s1626_s20   ;;  %s1133_s19 = sphi %s1217_s19, %s1625_s19   ;;  %s1129_s18 = sphi %s1215_s18, %s1624_s18  }
   0xa   : > { %p60_p0 = scmp.ne.s32.totalorder %s1133_s19, %s1129_s18  ;;  %p1604_p1 = scmp.eq.s32.totalorder %s1246_s24, 0 }
   0xb   : > { %p134_p3 = scmp.eq.s32.totalorder %s1607_s25, 1  ;;  %p728_p5 = scmp.ge.s32.totalorder %s1149_s23, 1 }
   0xc   : > { %p1257_p4 = por %p1604_p1, %p60_p0  ;;  %p197_p7 = scmp.lt.s32.totalorder %s1149_s23, 3 }
   0xd   : > { %p1262_p6 = por %p134_p3, %p60_p0  ;;  %s1151_s29 = smov [#allocation5]  }
   0xe   : > { %s1608_s26 = scalar_select %p1257_p4, 1, 0 }
   0xf   : > { %s1609_s27 = scalar_select %p1262_p6, 1, 0 }
  0x10   : > { %p1267_p8 = pnand %p728_p5, %p197_p7  ;;  %s209_s30 = sshll.u32 %s1151_s29, 4  ;;  %s1271_s30 = int_to_ptr.vmem [resolvable:$true] %s209_s30 }
  0x11   : > { %s1152_s7 = smov [#allocation7]   ;;  %s917_s11 = scalar_lea.hbm %s1599_s1, 256 }
  0x12   : > { %p810_p9 = pneg %p1267_p8  ;;  %s223_s8 = sshll.u32 %s1152_s7, 4  ;;  %s1282_s8 = int_to_ptr.vmem [resolvable:$true] %s223_s8 }
  0x13   : > { %p918_p12 = scmp.ne.s32.totalorder %s1599_s1, %s917_s11  ;;  %p924_p5 = scmp.lt.u32.totalorder %s917_s11, %s1599_s1 }
  0x14   : > { %p1278_p11 = pnand %p810_p9, %p1604_p1 }
  0x16   : > { %p919_p13 = pneg %p1278_p11 }
  0x18   : > { %p920_p0 = pnand %p919_p13, %p918_p12 }
  0x1a   : > { %p921_p3 = pneg %p920_p0 }
  0x1c   : > { %p926_p7 = pnand %p924_p5, %p921_p3 }
  0x1e   : > { %929 = shalt.err (!%p926_p7)
}
  0x1f   : > { %s930_s16 = scalar_lea.vmem %s1271_s30, 256  ;;  %p938_p2 = scmp.lt.s32.totalorder %s1271_s30, %s1271_s30 }
  0x20   : > { %p931_p9 = scmp.ne.s32.totalorder %s1271_s30, %s930_s16  ;;  %p939_p12 = scmp.lt.s32.totalorder %s930_s16, %s930_s16 }
  0x22   : > { %p933_p10 = pnand %p931_p9, %p919_p13  ;;  %p940_p0 = por %p939_p12, %p938_p2 }
  0x24   : > { %p934_p1 = pneg %p933_p10 }
  0x26   : > { %p941_p6 = pnand %p940_p0, %p934_p1 }
  0x28   : > { %944 = shalt.err (!%p941_p6)
}
  0x29   : > { %s1153_s17 = smov 64   ;;  %s1154_s29 = smov 4  }
  0x2a   : > { %813 = dma.hbm_to_vmem [thread:$0]  (!%p1278_p11), %s1599_s1, 256, %s1271_s30, [#allocation6], %s1153_s17, %s1153_s17, %s1154_s29  }
  0x2b   : > { %s945_s12 = scalar_lea.hbm %s1600_s2, 16 }
  0x2c   : > { %p946_p2 = scmp.ne.s32.totalorder %s1600_s2, %s945_s12  ;;  %p952_p10 = scmp.lt.u32.totalorder %s945_s12, %s1600_s2 }
  0x2e   : > { %p948_p1 = pnand %p946_p2, %p919_p13 }
  0x30   : > { %p949_p6 = pneg %p948_p1 }
  0x32   : > { %p954_p3 = pnand %p952_p10, %p949_p6 }
  0x34   : > { %957 = shalt.err (!%p954_p3)
}
  0x35   : > { %s958_s30 = scalar_lea.vmem %s1282_s8, 16  ;;  %s965_s17 = scalar_lea.vmem %s1282_s8, 32 }
  0x36   : > { %p959_p5 = scmp.ne.s32.totalorder %s1282_s8, %s958_s30  ;;  %p966_p12 = scmp.lt.s32.totalorder %s1282_s8, %s1282_s8 }
  0x37   : > { %p967_p0 = scmp.lt.s32.totalorder %s965_s17, %s958_s30 }
  0x38   : > { %p961_p7 = pnand %p959_p5, %p919_p13 }
  0x39   : > { %p968_p2 = por %p967_p0, %p966_p12 }
  0x3a   : > { %p962_p9 = pneg %p961_p7 }
  0x3c   : > { %p969_p1 = pnand %p968_p2, %p962_p9 }
  0x3e   : > { %972 = shalt.err (!%p969_p1)
}
  0x3f   : > { %816 = dma.hbm_to_vmem [thread:$0]  (!%p1278_p11), %s1600_s2, 16, %s1282_s8, [#allocation6]  }
  0x40   : > { %s38_s9 = sadd.s32 1, %s1145_s22  ;;  %s47_s10 = sadd.s32 1, %s1137_s20 }
  0x41   : > { %p40_p13 = scmp.ge.s32.totalorder %s38_s9, 2  ;;  %p54_p6 = scmp.ne.s32.totalorder %s1137_s20, %s1133_s19 }
  0x42   : > { %p55_p10 = scmp.eq.s32.totalorder %s1149_s23, 0  ;;  %p833_p3 = scmp.lt.s32.totalorder %s1149_s23, 2 }
  0x43   : > { %s1630_s9 = smov (%p40_p13, %s38_s9), 0  ;;  %p1612_p7 = scmp.eq.s32.totalorder %s1246_s24, 1 }
  0x44   : > { %p56_p5 = por %p55_p10, %p54_p6  ;;  %s42_s11 = ssub.s32 %s1145_s22, %s1630_s9 }
  0x45   : > { %p1347_p9 = por %p1612_p7, %p54_p6  ;;  %s234_s12 = sand.u32 1, %s1137_s20  }
  0x46   : > { %p45_p12 = scmp.eq.s32.totalorder %s42_s11, 0  ;;  %s732_s8 = sshll.u32 %s234_s12, 3 }
  0x47   : > { %s1613_s6 = scalar_select %p1347_p9, 1, 0 }
  0x48   : > { %s733_s13 = sshll.u32 %s1145_s22, 7  ;;  %s238_s17 = scalar_lea.vmem [#allocation2], %s732_s8 }
  0x49   : > { %s1356_s14 = scalar_select %p45_p12, %s1137_s20, %s47_s10  }
  0x4a   : > { %s1361_s30 = scalar_lea.hbm %s1598_s0, %s733_s13  ;;  %s246_s29 = sshll.u32 %s238_s17, 4  ;;  %s1369_s29 = int_to_ptr.vmem [resolvable:$true] %s246_s29 }
  0x4b   : > { %p1365_p11 = pnand %p833_p3, %p56_p5  ;;  %s235_s10 = scalar_lea.sflag [#allocation3], %s234_s12 }
  0x4c   : > { %s973_s11 = scalar_lea.hbm %s1361_s30, 128  ;;  %s978_s15 = scalar_lea.hbm %s1598_s0, 256 }
  0x4d   : > { %p974_p0 = scmp.ne.s32.totalorder %s1361_s30, %s973_s11  ;;  %p975_p2 = pneg %p1365_p11 }
  0x4e   : > { %p979_p6 = scmp.lt.u32.totalorder %s1361_s30, %s1598_s0  ;;  %p980_p10 = scmp.lt.u32.totalorder %s978_s15, %s973_s11 }
  0x4f   : > { %p976_p1 = pnand %p975_p2, %p974_p0  ;;  %p982_p5 = scmp.lt.u32.totalorder %s973_s11, %s1361_s30 }
  0x50   : > { %p981_p3 = por %p980_p10, %p979_p6 }
  0x51   : > { %p977_p13 = pneg %p976_p1 }
  0x52   : > { %p983_p7 = por %p982_p5, %p981_p3 }
  0x54   : > { %p984_p12 = pnand %p983_p7, %p977_p13 }
  0x56   : > { %987 = shalt.err (!%p984_p12)
}
  0x57   : > { %s988_s12 = scalar_lea.vmem %s1369_s29, 128  ;;  %s1155_s8 = smov [#allocation2]  }
  0x58   : > { %p989_p0 = scmp.ne.s32.totalorder %s1369_s29, %s988_s12  ;;  %s993_s13 = sshll.u32 %s1155_s8, 4  ;;  %s994_s13 = int_to_ptr.vmem [resolvable:$false] %s993_s13 }
  0x59   : > { %s995_s16 = scalar_lea.vmem %s994_s13, 256  ;;  %p996_p4 = scmp.lt.s32.totalorder %s1369_s29, %s994_s13 }
  0x5a   : > { %p991_p1 = pnand %p989_p0, %p975_p2  ;;  %p997_p6 = scmp.lt.s32.totalorder %s995_s16, %s988_s12 }
  0x5c   : > { %p992_p9 = pneg %p991_p1  ;;  %p998_p10 = por %p997_p6, %p996_p4 }
  0x5e   : > { %p999_p3 = pnand %p998_p10, %p992_p9 }
  0x60   : > { %1002 = shalt.err (!%p999_p3)
}
  0x61   : > { %820 = dma.hbm_to_vmem [thread:$0]  (!%p1365_p11), %s1361_s30, 128, %s1369_s29, %s235_s10  }
  0x62   : > { %255 = sbr.rel (%p1267_p8) target bundleno = 537 (0x219), region = 32  ;;  %s1399_s11 = sand.u32 (!%p1267_p8), 1, %s1133_s19  }
  0x63   : > { %s735_s15 = sshll.u32 (!%p1267_p8), %s1399_s11, 3  ;;  %s258_s17 = scalar_lea.sflag (!%p1267_p8), [#allocation3], %s1399_s11 }
  0x64   : > { %s261_s12 = scalar_lea.vmem (!%p1267_p8), [#allocation2], %s735_s15  ;;  %p1615_p4 = scmp.ne.s32.totalorder (!%p1267_p8), %s1608_s26, 0 }
  0x69   : > { %1112 = dma.done.wait (%p1615_p4), %s258_s17, 128  }
  0x6a   : > { %1114 = vsyncadd (%p1615_p4), %s258_s17, 4294967168  ;;  %p1616_p9 = scmp.eq.s32.totalorder %s1246_s24, 0 }
  0x6c   : > { %1116 = dma.done.wait (%p1616_p9), [#allocation6], 272   ;;  %p1617_p11 = pmov %p1616_p9 }
  0x6d   : > { %v1156_v0 = vmov 0.0   ;;  %vm1157_vm0 = vmmov 0   ;;  %v915_v1 = vld [vmem:[#allocation5] sm:$0xff]   ;;  %v916_v2 = vld [vmem:[#allocation5 + $0x8] sm:$0xff]   ;;  %v307_v3 = vld [vmem:[%s261_s12] sm:$0xff]  ;;  %vm331_vm1 = vcmask 261120   ;;  %v315_v5 = vlaneseq }
  0x6e   : > { %1118 = vsyncadd (%p1617_p11), [#allocation6], 4294967024  ;;  %786 = vmatprep.subr.bf16.mxu0 %v1156_v0  ;;  %790 = vmatprep.mubr.msk.bf16.mxu0 %vm1157_vm0, %v1156_v0  ;;  %v308_v4 = vpack.c.bf16 %v307_v3, %v307_v3  ;;  %v313_v7 = vld [vmem:[#allocation7] sm:$0x1]  ;;  %s1412_s26 = sshll.u32 %s1399_s11, 5  ;;  %vm377_vm2 = vcmask 27648  }
  0x6f   : > { %787 = vmatpush3.bf16.msra.mxu0 %v915_v1  ;;  %v316_v6 = vshrl.u32 %v315_v5, 7  ;;  %v314_v8 = vunpack.c.l.bf16 %v313_v7  ;;  %s1158_s28 = smov 88   ;;  %s1159_s30 = smov 96  }
  0x70   : > { %788 = vmatprep.subr.bf16.mxu0 %v1156_v0  ;;  %s1415_s29 = scalar_lea.vmem [#allocation8], %s1412_s26  ;;  %s1160_s7 = smov 84  }
  0x71   : > { %v317_v9 = vsub.s32 0, %v316_v6  ;;  %s1161_s10 = smov 92   ;;  %s1162_s8 = smov 76  }
  0x72   : > { %s1163_s13 = smov 80   ;;  %s1164_s16 = smov 68  }
  0x73   : > { %789 = vmatpush3.bf16.msra.mxu0 %v916_v2  ;;  %v318_v10 = vrot.slane %v314_v8, %v317_v9  ;;  %s1165_s15 = smov 72   ;;  %s1166_s17 = smov 64  }
  0x74   : > { %s1167_s12 = smov 124   ;;  %s1176_s25 = smov 44  }
  0x75   : > { %p1618_p2 = scmp.ne.s32.totalorder %s1613_s6, 0 }
  0x76   : > { %791 = vmatmul.mubr.msk.bf16.vlgmr.msra.gmra.mrb[0].mxu0 %vm331_vm1, %v308_v4 }
 0x149   : > { %v369_v11 = vpop.f32.mrb[0].mxu0 }
 0x14a   : > { %v370_v12 = vadd.f32 %v369_v11, %v318_v10  ;;  %v792_v13 = vpop.f32.mrb[1].mxu0 }
 0x14b   : > { %v372_v14 = vpop.f32.mrb[2].mxu0 }
 0x14c   : > { %v375_v15 = vmul.f32 0.5, %v370_v12  ;;  %v778_v16 = vpack.c.bf16 %v370_v12, %v370_v12  ;;  %v793_v17 = vpop.f32.mrb[3].mxu0 }
 0x14e   : > { %v376_v18 = vpack.c.bf16 %v375_v15, %v375_v15  ;;  %414 = vrot.lane.b32.xlu1 %v778_v16, %s1158_s28  ;;  %383 = vrot.lane.b32.xlu0 %v778_v16, %s1159_s30  ;;  %s1168_s28 = smov 60   ;;  %s1169_s30 = smov 120  }
 0x150   : > { %378 = vst.msk [vmem:[%s1415_s29] sm:$0xf] %vm377_vm2, %v376_v18 }
 0x152   : > { %429 = vrot.lane.b32.xlu1 %v778_v16, %s1160_s7  ;;  %399 = vrot.lane.b32.xlu0 %v778_v16, %s1161_s10  ;;  %s1170_s7 = smov 56   ;;  %s1171_s10 = smov 116  }
 0x156   : > { %459 = vrot.lane.b32.xlu1 %v778_v16, %s1162_s8  ;;  %444 = vrot.lane.b32.xlu0 %v778_v16, %s1163_s13  ;;  %s1172_s8 = smov 52   ;;  %s1173_s13 = smov 112  }
 0x15a   : > { %489 = vrot.lane.b32.xlu1 %v778_v16, %s1164_s16  ;;  %474 = vrot.lane.b32.xlu0 %v778_v16, %s1165_s15  ;;  %s1174_s16 = smov 48   ;;  %s1175_s15 = smov 108  }
 0x15e   : > { %387 = vrot.lane.b32.xlu0 %v778_v16, %s1166_s17  ;;  %394 = vrot.lane.b32.xlu1 %v376_v18, %s1167_s12  ;;  %s1177_s12 = smov 104  }
 0x162   : > { %404 = vrot.lane.b32.xlu0 %v778_v16, %s1168_s28  ;;  %409 = vrot.lane.b32.xlu1 %v376_v18, %s1169_s30  ;;  %s1178_s28 = smov 40   ;;  %s1179_s30 = smov 100  }
 0x166   : > { %419 = vrot.lane.b32.xlu0 %v778_v16, %s1170_s7  ;;  %424 = vrot.lane.b32.xlu1 %v376_v18, %s1171_s10  ;;  %s1180_s7 = smov 36   ;;  %s298_s10 = scalar_lea.vmem [#allocation9], %s1412_s26 }
 0x16a   : > { %434 = vrot.lane.b32.xlu0 %v778_v16, %s1172_s8  ;;  %439 = vrot.lane.b32.xlu1 %v376_v18, %s1173_s13  ;;  %s504_s8 = sand.u32 1, %s1246_s24   ;;  %s1427_s13 = sshll.u32 %s1141_s21, 9 }
 0x16b   : > { %s1441_s21 = scalar_lea.sflag [#allocation10], %s504_s8 }
 0x16e   : > { %449 = vrot.lane.b32.xlu0 %v778_v16, %s1174_s16  ;;  %454 = vrot.lane.b32.xlu1 %v376_v18, %s1175_s15 }
 0x172   : > { %464 = vrot.lane.b32.xlu0 %v778_v16, %s1176_s25  ;;  %469 = vrot.lane.b32.xlu1 %v376_v18, %s1177_s12  ;;  %s541_s25 = sshll.u32 %s298_s10, 4  ;;  %s1437_s12 = scalar_lea.hbm %s1602_s4, %s1427_s13  ;;  %s1431_s25 = int_to_ptr.vmem [resolvable:$true] %s541_s25 }
 0x173   : > { %s1003_s24 = scalar_lea.vmem %s1431_s25, 512 }
 0x174   : > { %p1004_p8 = scmp.ne.s32.totalorder %s1431_s25, %s1003_s24 }
 0x176   : > { %479 = vrot.lane.b32.xlu0 %v778_v16, %s1178_s28  ;;  %484 = vrot.lane.b32.xlu1 %v376_v18, %s1179_s30  ;;  %p1005_p13 = pnand %p1004_p8, %p1618_p2  ;;  %s1181_s28 = smov [#allocation9]  }
 0x177   : > { %s1007_s30 = sshll.u32 %s1181_s28, 4  ;;  %s1008_s30 = int_to_ptr.vmem [resolvable:$false] %s1007_s30 }
 0x178   : > { %p1006_p5 = pneg %p1005_p13  ;;  %p1010_p7 = scmp.lt.s32.totalorder %s1431_s25, %s1008_s30 }
 0x17a   : > { %494 = vrot.lane.b32.xlu0 %v778_v16, %s1180_s7  ;;  %s1009_s7 = scalar_lea.vmem %s1008_s30, 1024 }
 0x17b   : > { %p1011_p12 = scmp.lt.s32.totalorder %s1009_s7, %s1003_s24 }
 0x17d   : > { %p1012_p0 = por %p1011_p12, %p1010_p7 }
 0x17f   : > { %p1013_p1 = pnand %p1012_p0, %p1006_p5 }
 0x1c0   : > { %v415_v19 = vpop.permute.xlu1 %414  ;;  %v384_v20 = vpop.permute.xlu0 %383 }
 0x1c1   : > { %750 = vst.msk [vmem:[%s298_s10 + $0x8] sm:$0xf] %vm377_vm2, %v415_v19  ;;  %386 = vst.msk [vmem:[%s298_s10] sm:$0xf] %vm377_vm2, %v384_v20 }
 0x1c4   : > { %v430_v21 = vpop.permute.xlu1 %429  ;;  %v400_v22 = vpop.permute.xlu0 %399 }
 0x1c5   : > { %753 = vst.msk [vmem:[%s298_s10 + $0xc] sm:$0xf] %vm377_vm2, %v430_v21  ;;  %747 = vst.msk [vmem:[%s298_s10 + $0x4] sm:$0xf] %vm377_vm2, %v400_v22 }
 0x1c8   : > { %v460_v23 = vpop.permute.xlu1 %459  ;;  %v445_v24 = vpop.permute.xlu0 %444 }
 0x1c9   : > { %759 = vst.msk [vmem:[%s298_s10 + $0x14] sm:$0xf] %vm377_vm2, %v460_v23  ;;  %756 = vst.msk [vmem:[%s298_s10 + $0x10] sm:$0xf] %vm377_vm2, %v445_v24 }
 0x1cc   : > { %v490_v25 = vpop.permute.xlu1 %489  ;;  %v475_v26 = vpop.permute.xlu0 %474 }
 0x1cd   : > { %765 = vst.msk [vmem:[%s298_s10 + $0x1c] sm:$0xf] %vm377_vm2, %v490_v25  ;;  %762 = vst.msk [vmem:[%s298_s10 + $0x18] sm:$0xf] %vm377_vm2, %v475_v26 }
 0x1ce   : > { %1016 = shalt.err (!%p1013_p1)
}
 0x1cf   : > { %s1017_s10 = scalar_lea.hbm %s1437_s12, 512  ;;  %s1021_s15 = scalar_lea.hbm %s1602_s4, 1024 }
 0x1d0   : > { %p1018_p6 = scmp.ne.s32.totalorder %s1437_s12, %s1017_s10  ;;  %p1022_p4 = scmp.lt.u32.totalorder %s1437_s12, %s1602_s4 }
 0x1d1   : > { %p1023_p9 = scmp.lt.u32.totalorder %s1021_s15, %s1017_s10  ;;  %p1025_p8 = scmp.lt.u32.totalorder %s1017_s10, %s1437_s12 }
 0x1d2   : > { %p1019_p10 = pnand %p1018_p6, %p1618_p2 }
 0x1d3   : > { %p1024_p11 = por %p1023_p9, %p1022_p4 }
 0x1d4   : > { %p1020_p3 = pneg %p1019_p10 }
 0x1d5   : > { %p1026_p13 = por %p1025_p8, %p1024_p11 }
 0x1d7   : > { %p1027_p5 = pnand %p1026_p13, %p1020_p3 }
 0x1d9   : > { %1030 = shalt.err (!%p1027_p5)
}
 0x1da   : > { %s1182_s24 = smov 4   ;;  %v388_v27 = vpop.permute.xlu0 %387  ;;  %v395_v28 = vpop.permute.xlu1 %394  ;;  %s1469_s7 = scalar_lea.vmem [#allocation11], %s1412_s26 }
 0x1db   : > { %805 = dma.vmem_to_hbm [thread:$0]  (%p1618_p2), %s1431_s25, 512, %s1437_s12, %s1441_s21, %s1166_s17, %s1166_s17, %s1182_s24  }
 0x1dc   : > { %390 = vst.msk [vmem:[%s1469_s7] sm:$0xf] %vm377_vm2, %v388_v27  ;;  %746 = vst.msk [vmem:[%s1415_s29 + $0x4] sm:$0xf] %vm377_vm2, %v395_v28  ;;  %s524_s26 = sshll.u32 %s1415_s29, 4  ;;  %s1502_s10 = scalar_lea.hbm %s1601_s3, %s1427_s13  ;;  %s1496_s26 = int_to_ptr.vmem [resolvable:$true] %s524_s26 }
 0x1dd   : > { %s1031_s15 = scalar_lea.vmem %s1496_s26, 512  ;;  %s1183_s28 = smov [#allocation8]  }
 0x1de   : > { %v405_v29 = vpop.permute.xlu0 %404  ;;  %v410_v30 = vpop.permute.xlu1 %409  ;;  %p1032_p7 = scmp.ne.s32.totalorder %s1496_s26, %s1031_s15  ;;  %s1035_s30 = sshll.u32 %s1183_s28, 4  ;;  %s1036_s30 = int_to_ptr.vmem [resolvable:$false] %s1035_s30 }
 0x1df   : > { %748 = vst.msk [vmem:[%s1469_s7 + $0x4] sm:$0xf] %vm377_vm2, %v405_v29  ;;  %749 = vst.msk [vmem:[%s1415_s29 + $0x8] sm:$0xf] %vm377_vm2, %v410_v30  ;;  %s1037_s25 = scalar_lea.vmem %s1036_s30, 1024  ;;  %p1038_p1 = scmp.lt.s32.totalorder %s1496_s26, %s1036_s30 }
 0x1e0   : > { %p1033_p12 = pnand %p1032_p7, %p1618_p2  ;;  %p1039_p6 = scmp.lt.s32.totalorder %s1037_s25, %s1031_s15 }
 0x1e2   : > { %v420_v31 = vpop.permute.xlu0 %419  ;;  %v425_v32 = vpop.permute.xlu1 %424  ;;  %p1034_p0 = pneg %p1033_p12  ;;  %p1040_p10 = por %p1039_p6, %p1038_p1 }
 0x1e3   : > { %751 = vst.msk [vmem:[%s1469_s7 + $0x8] sm:$0xf] %vm377_vm2, %v420_v31  ;;  %752 = vst.msk [vmem:[%s1415_s29 + $0xc] sm:$0xf] %vm377_vm2, %v425_v32 }
 0x1e4   : > { %p1041_p3 = pnand %p1040_p10, %p1034_p0 }
 0x1e6   : > { %v435_v33 = vpop.permute.xlu0 %434  ;;  %v440_v34 = vpop.permute.xlu1 %439 }
 0x1e7   : > { %754 = vst.msk [vmem:[%s1469_s7 + $0xc] sm:$0xf] %vm377_vm2, %v435_v33  ;;  %755 = vst.msk [vmem:[%s1415_s29 + $0x10] sm:$0xf] %vm377_vm2, %v440_v34 }
 0x1ea   : > { %v450_v35 = vpop.permute.xlu0 %449  ;;  %v455_v36 = vpop.permute.xlu1 %454 }
 0x1eb   : > { %757 = vst.msk [vmem:[%s1469_s7 + $0x10] sm:$0xf] %vm377_vm2, %v450_v35  ;;  %758 = vst.msk [vmem:[%s1415_s29 + $0x14] sm:$0xf] %vm377_vm2, %v455_v36 }
 0x1ee   : > { %v465_v37 = vpop.permute.xlu0 %464  ;;  %v470_v38 = vpop.permute.xlu1 %469 }
 0x1ef   : > { %760 = vst.msk [vmem:[%s1469_s7 + $0x14] sm:$0xf] %vm377_vm2, %v465_v37  ;;  %761 = vst.msk [vmem:[%s1415_s29 + $0x18] sm:$0xf] %vm377_vm2, %v470_v38 }
 0x1f2   : > { %v480_v39 = vpop.permute.xlu0 %479  ;;  %v485_v40 = vpop.permute.xlu1 %484 }
 0x1f3   : > { %763 = vst.msk [vmem:[%s1469_s7 + $0x18] sm:$0xf] %vm377_vm2, %v480_v39  ;;  %764 = vst.msk [vmem:[%s1415_s29 + $0x1c] sm:$0xf] %vm377_vm2, %v485_v40 }
 0x1f4   : > { %1044 = shalt.err (!%p1041_p3)
}
 0x1f5   : > { %s1045_s29 = scalar_lea.hbm %s1502_s10, 512  ;;  %s1049_s28 = scalar_lea.hbm %s1601_s3, 1024 }
 0x1f6   : > { %p1046_p4 = scmp.ne.s32.totalorder %s1502_s10, %s1045_s29  ;;  %p1050_p8 = scmp.lt.u32.totalorder %s1502_s10, %s1601_s3 }
 0x1f7   : > { %p1051_p13 = scmp.lt.u32.totalorder %s1049_s28, %s1045_s29  ;;  %p1053_p7 = scmp.lt.u32.totalorder %s1045_s29, %s1502_s10 }
 0x1f8   : > { %p1047_p9 = pnand %p1046_p4, %p1618_p2 }
 0x1f9   : > { %p1052_p5 = por %p1051_p13, %p1050_p8 }
 0x1fa   : > { %p1048_p11 = pneg %p1047_p9 }
 0x1fb   : > { %p1054_p12 = por %p1053_p7, %p1052_p5 }
 0x1fd   : > { %p1055_p0 = pnand %p1054_p12, %p1048_p11 }
 0x1ff   : > { %1058 = shalt.err (!%p1055_p0)
}
 0x200   : > { %s1619_s15 = scalar_lea.sflag [#allocation4], %s1399_s11  ;;  %s1620_s8 = sshll.u32 %s1469_s7, 4  ;;  %v495_v41 = vpop.permute.xlu0 %494  ;;  %s1538_s8 = int_to_ptr.vmem [resolvable:$true] %s1620_s8 }
 0x201   : > { %804 = dma.vmem_to_hbm [thread:$0]  (%p1618_p2), %s1496_s26, 512, %s1502_s10, %s1619_s15, %s1166_s17, %s1166_s17, %s1182_s24  }
 0x202   : > { %s1544_s29 = scalar_lea.hbm %s1603_s5, %s1427_s13  ;;  %766 = vst.msk [vmem:[%s1469_s7 + $0x1c] sm:$0xf] %vm377_vm2, %v495_v41  ;;  %s1059_s11 = scalar_lea.vmem %s1538_s8, 512 }
 0x203   : > { %p1060_p1 = scmp.ne.s32.totalorder %s1538_s8, %s1059_s11  ;;  %s1184_s26 = smov [#allocation11]  }
 0x204   : > { %s1063_s10 = sshll.u32 %s1184_s26, 4  ;;  %s1064_s10 = int_to_ptr.vmem [resolvable:$false] %s1063_s10 }
 0x205   : > { %p1061_p6 = pnand %p1060_p1, %p1618_p2  ;;  %s1065_s12 = scalar_lea.vmem %s1064_s10, 1024 }
 0x206   : > { %p1066_p3 = scmp.lt.s32.totalorder %s1538_s8, %s1064_s10  ;;  %p1067_p4 = scmp.lt.s32.totalorder %s1065_s12, %s1059_s11 }
 0x207   : > { %p1062_p10 = pneg %p1061_p6 }
 0x208   : > { %p1068_p9 = por %p1067_p4, %p1066_p3 }
 0x20a   : > { %p1069_p11 = pnand %p1068_p9, %p1062_p10 }
 0x20c   : > { %1072 = shalt.err (!%p1069_p11)
}
 0x20d   : > { %s1073_s13 = scalar_lea.hbm %s1544_s29, 512  ;;  %s1077_s30 = scalar_lea.hbm %s1603_s5, 1024 }
 0x20e   : > { %p1074_p8 = scmp.ne.s32.totalorder %s1544_s29, %s1073_s13  ;;  %p1078_p7 = scmp.lt.u32.totalorder %s1544_s29, %s1603_s5 }
 0x20f   : > { %p1079_p12 = scmp.lt.u32.totalorder %s1077_s30, %s1073_s13  ;;  %p1081_p1 = scmp.lt.u32.totalorder %s1073_s13, %s1544_s29 }
 0x210   : > { %p1075_p13 = pnand %p1074_p8, %p1618_p2 }
 0x211   : > { %p1080_p0 = por %p1079_p12, %p1078_p7 }
 0x212   : > { %p1076_p5 = pneg %p1075_p13 }
 0x213   : > { %p1082_p6 = por %p1081_p1, %p1080_p0 }
 0x215   : > { %p1083_p10 = pnand %p1082_p6, %p1076_p5 }
 0x217   : > { %1086 = shalt.err (!%p1083_p10)
}
 0x218   : > { %806 = dma.vmem_to_hbm [thread:$0]  (%p1618_p2), %s1538_s8, 512, %s1544_s29, %s1441_s21, %s1166_s17, %s1166_s17, %s1182_s24  }
 0x219 PF: > { %s573_s25 = sand.u32 1, %s1129_s18   ;;  %p1621_p3 = scmp.ne.s32.totalorder %s1609_s27, 0 }
 0x21a   : > { %p1622_p4 = scmp.ge.s32.totalorder %s1149_s23, 2  ;;  %s574_s11 = scalar_lea.sflag [#allocation4], %s573_s25 }
 0x21c   : > { %p822_p9 = pnand %p1622_p4, %p1621_p3 }
 0x21e   : > { %1120 = dma.done.wait (!%p822_p9), %s574_s11, 512  }
 0x21f   : > { %1122 = vsyncadd (!%p822_p9), %s574_s11, 4294966784  ;;  %s1623_s6 = sadd.s32 4294967294, %s1149_s23  }
 0x220   : > { %s582_s26 = sand.u32 1, %s1623_s6  }
 0x221   : > { %s583_s10 = scalar_lea.sflag [#allocation10], %s582_s26 }
 0x222   : > { %1124 = dma.done.wait (!%p822_p9), %s583_s10, 1024  }
 0x223   : > { %1126 = vsyncadd (!%p822_p9), %s583_s10, 4294966272  ;;  %s26_s23 = sadd.s32 1, %s1149_s23   ;;  %s1624_s18 = smov %s1133_s19 }
 0x224   : > { %p23_p2 = scmp.ge.s32.totalorder %s26_s23, 4   ;;  %s1625_s19 = smov %s1137_s20 }
 0x225   : > { %s1626_s20 = smov %s1356_s14  ;;  %s1627_s21 = smov %s1145_s22 }
 0x226   : > { %s1628_s22 = smov %s1630_s9  ;;  %25 = sbr.rel (!%p23_p2) target bundleno = 9 (0x9), region = 138 }
 0x22d   :  { %597 = vsyncpa [#allocation3], 1 }
 0x22e   :  { %599 = vsyncpa [#allocation3 + $0x1], 1 }
 0x22f   :  { %600 = vsyncpa [#allocation6], 1 }
 0x230   :  { %601 = vsyncpa [#allocation4], 1 }
 0x231   :  { %603 = vsyncpa [#allocation4 + $0x1], 1 }
 0x232   :  { %604 = vsyncpa [#allocation10], 1 }
 0x233   :  { %606 = vsyncpa [#allocation10 + $0x1], 1 }

</bundles_post_ra>
